<compile_context>
chip_gen: v7x
topology: tpu7x:2x2x1
jax: 0.10.0
libtpu: 0.0.40
codegen_flags: <defaults>
</compile_context>

<pallas_src>
import functools

import jax
import jax.numpy as jnp
from jax.experimental import pallas as pl
from jax.experimental.pallas import tpu as pltpu

BN_EPS = 1e-5

# 3x3 tap order: the 8 shifted taps first, the center tap last.
_TAPS = [(dy, dx) for dy in range(3) for dx in range(3) if (dy, dx) != (1, 1)]
_TAPS = _TAPS + [(1, 1)]


# ---------------------------------------------------------------------------
# Fused Block2 kernel (imgs_per_step images packed along the lane axis)
# ---------------------------------------------------------------------------
def _block2_kernel(x_ref, m_ref, w_a_ref, w_b_ref, misc_ref, o_ref, stk_ref,
                   *, H, W):
    """Fused Block2 on a lane-dense (C, imgs*H*W) layout.

    x_ref:    (1, Cin, L)            packed input, L = imgs * H*W
    m_ref:    (8, L)                 precomputed border masks (non-center taps)
    w_a_ref:  (2*Cout, 9*Cin)  bf16  [identity ; conv1] weights, BN scale folded
    w_b_ref:  (Cout, 9*Cout)   bf16  conv2 weights, BN scale folded
    misc_ref: (2*Cout, 2+2*Cmid)     col0: sh_a, col1: sh_b, then se_w1^T, se_w2
    o_ref:    (1, Cout, L)
    stk_ref:  (9*max(Cin,Cout), L) bf16 VMEM scratch for the stacked taps
    """
    HW = H * W
    Cin = x_ref.shape[1]
    L = x_ref.shape[2]
    imgs = L // HW
    Cout = w_b_ref.shape[0]
    Cmid = (misc_ref.shape[1] - 2) // 2

    x = x_ref[0]                                     # (Cin, L) f32

    sh_a = misc_ref[:, 0:1]                          # (2*Cout, 1) BN shifts
    sh_b = misc_ref[0:Cout, 1:2]                     # (Cout, 1)
    w1t = misc_ref[0:Cout, 2:2 + Cmid]               # (Cout, Cmid) SE fc1^T
    w2 = misc_ref[0:Cout, 2 + Cmid:2 + 2 * Cmid]     # (Cout, Cmid) SE fc2

    def conv3x3(src, C, w_ref):
        """Stack 9 shifted+masked taps along K in VMEM, then one MXU dot."""
        for t, (dy, dx) in enumerate(_TAPS):
            if (dy, dx) == (1, 1):
                xs = src                             # center tap: no shift/mask
            else:
                off = (dy - 1) * W + (dx - 1)        # source pixel = dest + off
                xs = pltpu.roll(src, shift=(-off) % L, axis=1)
                xs = xs * m_ref[t:t + 1, :]          # zero out-of-image taps
            stk_ref[t * C:(t + 1) * C, :] = xs.astype(stk_ref.dtype)
        return jnp.dot(w_ref[...], stk_ref[0:9 * C, :],
                       preferred_element_type=jnp.float32)

    # identity branch + conv1 share the same input: one MXU pass, M = 2*Cout.
    a = conv3x3(x, Cin, w_a_ref) + sh_a              # BN (scale pre-folded)
    a = jnp.maximum(a, 0.0)                          # ReLU on both branches
    identity = a[:Cout]                              # Block1(x)
    h = a[Cout:]                                     # relu(bn1(conv1(x)))

    out = conv3x3(h, Cout, w_b_ref) + sh_b           # bn2(conv2(.)), no ReLU

    # SE (GAP -> FC -> ReLU -> FC -> sigmoid), scale, residual add, final ReLU.
    # Done per packed image on VPU/XLU only (no degenerate MXU matmuls).
    inv_hw = 1.0 / HW
    for i in range(imgs):
        lo, hi = i * HW, (i + 1) * HW
        oi = out[:, lo:hi]                                            # (Cout, HW)
        gap = jnp.sum(oi, axis=1, keepdims=True) * inv_hw             # (Cout, 1)
        h1 = jnp.maximum(jnp.sum(w1t * gap, axis=0, keepdims=True), 0.0)   # (1, Cmid)
        se = jax.nn.sigmoid(jnp.sum(w2 * h1, axis=1, keepdims=True))       # (Cout, 1)
        res = jnp.maximum(oi * se + identity[:, lo:hi], 0.0)
        o_ref[0, :, lo:hi] = res.astype(o_ref.dtype)


# ---------------------------------------------------------------------------
# Wrapper helpers
# ---------------------------------------------------------------------------
def _fold_conv_bn(p):
    """Fold BN scale into conv weight; return ((O, 9*I) weights, (O,1) shift)."""
    scale = p["gamma"] * jax.lax.rsqrt(p["var"] + BN_EPS)
    shift = p["beta"] - p["mean"] * scale
    wf = p["w"] * scale[:, None, None, None]            # (O, I, 3, 3)
    w2d = jnp.concatenate([wf[:, :, dy, dx] for (dy, dx) in _TAPS], axis=1)
    return w2d, shift[:, None].astype(jnp.float32)


def _tap_masks(H, W, imgs):
    """(8, imgs*H*W) f32 border masks, one row per non-center tap (_TAPS order)."""
    HW = H * W
    pos = jnp.arange(imgs * HW, dtype=jnp.int32)
    row = (pos // W) % H                                 # per-image row/col
    col = pos % W
    rows = []
    for (dy, dx) in _TAPS[:-1]:
        m = jnp.ones_like(pos, dtype=jnp.float32)
        if dy == 0:
            m = m * (row >= 1)
        if dy == 2:
            m = m * (row <= H - 2)
        if dx == 0:
            m = m * (col >= 1)
        if dx == 2:
            m = m * (col <= W - 2)
        rows.append(m)
    return jnp.stack(rows, axis=0)


def _choose_imgs_per_step(B, HW, max_lanes=2048):
    """Largest divisor of B that fits the lane budget, keeping >=2 grid steps."""
    divs = [d for d in range(1, B + 1) if B % d == 0 and d * HW <= max_lanes]
    if not divs:
        return 1
    multi = [d for d in divs if B // d >= 2]             # v7x: both TCs get work
    return max(multi) if multi else max(divs)


@jax.jit
def block2_forward(params, x_nchw):
    """Block2 forward. x_nchw: (B, Cin, H, W) f32 -> (B, Cout, H, W) f32."""
    B, Cin, H, W = x_nchw.shape
    HW = H * W
    imgs = _choose_imgs_per_step(B, HW)
    nsteps = B // imgs
    L = imgs * HW

    w_id, sh_id = _fold_conv_bn(params["identity"])      # (Cout, 9*Cin)
    w_c1, sh_c1 = _fold_conv_bn(params["cb1"])
    w_cb2, sh_cb2 = _fold_conv_bn(params["cb2"])         # (Cout, 9*Cout)
    Cout = w_cb2.shape[0]
    w_a = jnp.concatenate([w_id, w_c1], axis=0).astype(jnp.bfloat16)  # (2*Cout, 9*Cin)
    w_b = w_cb2.astype(jnp.bfloat16)
    sh_a = jnp.concatenate([sh_id, sh_c1], axis=0)       # (2*Cout, 1)

    # Pack the tiny per-channel params into one lane-dense slab.
    Cmid = params["se_w1"].shape[0]
    misc = jnp.zeros((2 * Cout, 2 + 2 * Cmid), jnp.float32)
    misc = misc.at[:, 0:1].set(sh_a)
    misc = misc.at[:Cout, 1:2].set(sh_cb2)
    misc = misc.at[:Cout, 2:2 + Cmid].set(params["se_w1"].T.astype(jnp.float32))
    misc = misc.at[:Cout, 2 + Cmid:].set(params["se_w2"].astype(jnp.float32))

    masks = _tap_masks(H, W, imgs)                       # (8, L)

    # Pack `imgs` images along the lane axis: (nsteps, Cin, imgs*HW).
    xp = (x_nchw.astype(jnp.float32)
          .reshape(nsteps, imgs, Cin, HW)
          .transpose(0, 2, 1, 3)
          .reshape(nsteps, Cin, L))

    kernel = functools.partial(_block2_kernel, H=H, W=W)
    cmax = max(Cin, Cout)
    out = pl.pallas_call(
        kernel,
        out_shape=jax.ShapeDtypeStruct((nsteps, Cout, L), jnp.float32),
        grid=(nsteps,),
        in_specs=[
            pl.BlockSpec((1, Cin, L), lambda b: (b, 0, 0)),
            pl.BlockSpec((8, L), lambda b: (0, 0)),
            pl.BlockSpec((2 * Cout, 9 * Cin), lambda b: (0, 0)),
            pl.BlockSpec((Cout, 9 * Cout), lambda b: (0, 0)),
            pl.BlockSpec((2 * Cout, 2 + 2 * Cmid), lambda b: (0, 0)),
        ],
        out_specs=pl.BlockSpec((1, Cout, L), lambda b: (b, 0, 0)),
        scratch_shapes=[pltpu.VMEM((9 * cmax, L), jnp.bfloat16)],
        compiler_params=pltpu.CompilerParams(
            dimension_semantics=("parallel",)),
    )(xp, masks, w_a, w_b, misc)

    return (out.reshape(nsteps, Cout, imgs, H, W)
            .transpose(0, 2, 1, 3, 4)
            .reshape(B, Cout, H, W))


# ---------------------------------------------------------------------------
# Parameter init (deterministic, PyTorch-convention layouts)
# ---------------------------------------------------------------------------
def _init_conv_bn(key, cin, cout):
    kw, kg, kb, km, kv = jax.random.split(key, 5)
    fan_in = 3 * 3 * cin
    return dict(
        w=jax.random.normal(kw, (cout, cin, 3, 3), jnp.float32)
          * (1.0 / jnp.sqrt(float(fan_in))),
        gamma=1.0 + 0.1 * jax.random.normal(kg, (cout,), jnp.float32),
        beta=0.1 * jax.random.normal(kb, (cout,), jnp.float32),
        mean=0.1 * jax.random.normal(km, (cout,), jnp.float32),
        var=1.0 + 0.1 * jnp.abs(jax.random.normal(kv, (cout,), jnp.float32)),
    )


def init_block2_params(key, cin, cout, reduction=16):
    k_id, k_c1, k_c2, k_s1, k_s2 = jax.random.split(key, 5)
    cmid = max(cout // reduction, 1)
    return dict(
        identity=_init_conv_bn(k_id, cin, cout),
        cb1=_init_conv_bn(k_c1, cin, cout),
        cb2=_init_conv_bn(k_c2, cout, cout),
        # nn.Linear weight layout: (out_features, in_features), bias=False.
        se_w1=jax.random.normal(k_s1, (cmid, cout), jnp.float32)
              * (1.0 / jnp.sqrt(float(cout))),
        se_w2=jax.random.normal(k_s2, (cout, cmid), jnp.float32)
              * (1.0 / jnp.sqrt(float(cmid))),
    )


# ---------------------------------------------------------------------------
# Pure-JAX reference (correctness check)
# ---------------------------------------------------------------------------
def _ref_conv_bn(x, p, relu):
    y = jax.lax.conv_general_dilated(
        x, p["w"], window_strides=(1, 1), padding="SAME",
        dimension_numbers=("NCHW", "OIHW", "NCHW"))
    scale = p["gamma"] * jax.lax.rsqrt(p["var"] + BN_EPS)
    shift = p["beta"] - p["mean"] * scale
    y = y * scale[None, :, None, None] + shift[None, :, None, None]
    return jnp.maximum(y, 0.0) if relu else y


def reference_block2(params, x):
    identity = _ref_conv_bn(x, params["identity"], True)
    out = _ref_conv_bn(x, params["cb1"], True)
    out = _ref_conv_bn(out, params["cb2"], False)
    y = jnp.mean(out, axis=(2, 3))                       # (B, C)
    y = jnp.maximum(y @ params["se_w1"].T, 0.0)          # (B, Cmid)
    y = jax.nn.sigmoid(y @ params["se_w2"].T)            # (B, C)
    return jnp.maximum(out * y[:, :, None, None] + identity, 0.0)


# ---------------------------------------------------------------------------
if __name__ == "__main__":
    key = jax.random.PRNGKey(0)
    pkey, xkey = jax.random.split(key)

    # Small NCHW shapes consistent with the module (SE needs channels >= 16).
    B, C, H, W = 4, 16, 16, 16
    params = init_block2_params(pkey, C, C)
    x = jax.random.normal(xkey, (B, C, H, W), jnp.float32)

    out = jax.block_until_ready(block2_forward(params, x))
    assert out.shape == (B, C, H, W), out.shape

    ref = reference_block2(params, x)
    rel_err = jnp.max(jnp.abs(out - ref)) / (jnp.max(jnp.abs(ref)) + 1e-6)
    assert rel_err < 3e-2, f"mismatch vs reference: rel_err={rel_err}"

    print("KERNEL_OK")
</pallas_src>

<mosaic_0001>
module attributes {stable_mosaic.version = 11 : i64} {
  func.func @_block2_kernel(%arg0: i32, %arg1: memref<1x16x512xf32, #tpu.memory_space<vmem>>, %arg2: memref<8x512xf32, #tpu.memory_space<vmem>>, %arg3: memref<32x144xbf16, #tpu.memory_space<vmem>>, %arg4: memref<16x144xbf16, #tpu.memory_space<vmem>>, %arg5: memref<32x4xf32, #tpu.memory_space<vmem>>, %arg6: memref<1x16x512xf32, #tpu.memory_space<vmem>>, %arg7: memref<144x512xbf16, #tpu.memory_space<vmem>>) attributes {dimension_semantics = [#tpu.dimension_semantics<parallel>], iteration_bounds = array<i64: 2>, scalar_prefetch = 0 : i64, scratch_operands = 1 : i64, tpu.core_type = #tpu.core_type<tc>, window_params = [{transform_indices = @transform_0, window_bounds = array<i64: 1, 16, 512>}, {pipeline_mode = #tpu.pipeline_mode<synchronous>, transform_indices = @transform_1, window_bounds = array<i64: 8, 512>}, {pipeline_mode = #tpu.pipeline_mode<synchronous>, transform_indices = @transform_2, window_bounds = array<i64: 32, 144>}, {pipeline_mode = #tpu.pipeline_mode<synchronous>, transform_indices = @transform_3, window_bounds = array<i64: 16, 144>}, {pipeline_mode = #tpu.pipeline_mode<synchronous>, transform_indices = @transform_4, window_bounds = array<i64: 32, 4>}, {transform_indices = @transform_5, window_bounds = array<i64: 1, 16, 512>}]} {
    %c0 = arith.constant 0 : index
    %c0_0 = arith.constant 0 : index
    %c0_1 = arith.constant 0 : index
    %0 = vector.load %arg1[%c0, %c0_0, %c0_1] : memref<1x16x512xf32, #tpu.memory_space<vmem>>, vector<1x16x512xf32>
    %1 = vector.shape_cast %0 : vector<1x16x512xf32> to vector<16x512xf32>
    %c0_2 = arith.constant 0 : index
    %c0_3 = arith.constant 0 : index
    %2 = vector.load %arg5[%c0_2, %c0_3] : memref<32x4xf32, #tpu.memory_space<vmem>>, vector<32x1xf32>
    %c0_4 = arith.constant 0 : index
    %c1 = arith.constant 1 : index
    %3 = vector.load %arg5[%c0_4, %c1] : memref<32x4xf32, #tpu.memory_space<vmem>>, vector<16x1xf32>
    %c0_5 = arith.constant 0 : index
    %c2 = arith.constant 2 : index
    %4 = vector.load %arg5[%c0_5, %c2] : memref<32x4xf32, #tpu.memory_space<vmem>>, vector<16x1xf32>
    %c0_6 = arith.constant 0 : index
    %c3 = arith.constant 3 : index
    %5 = vector.load %arg5[%c0_6, %c3] : memref<32x4xf32, #tpu.memory_space<vmem>>, vector<16x1xf32>
    %c17_i32 = arith.constant 17 : i32
    %6 = tpu.dynamic_rotate %1 by %c17_i32 dim 1 : vector<16x512xf32>, i32 -> vector<16x512xf32>
    %c0_7 = arith.constant 0 : index
    %c0_8 = arith.constant 0 : index
    %7 = vector.load %arg2[%c0_7, %c0_8] : memref<8x512xf32, #tpu.memory_space<vmem>>, vector<1x512xf32>
    %8 = vector.broadcast %7 : vector<1x512xf32> to vector<16x512xf32>
    %9 = arith.mulf %6, %8 : vector<16x512xf32>
    %10 = arith.truncf %9 : vector<16x512xf32> to vector<16x512xbf16>
    %c0_9 = arith.constant 0 : index
    %c0_10 = arith.constant 0 : index
    %11 = vector.load %arg7[%c0_9, %c0_10] : memref<144x512xbf16, #tpu.memory_space<vmem>>, vector<16x512xbf16>
    tpu.vector_store %arg7[%c0_9, %c0_10], %10 {strides = array<i32>} : memref<144x512xbf16, #tpu.memory_space<vmem>>, vector<16x512xbf16>,
    %c16_i32 = arith.constant 16 : i32
    %12 = tpu.dynamic_rotate %1 by %c16_i32 dim 1 : vector<16x512xf32>, i32 -> vector<16x512xf32>
    %c1_11 = arith.constant 1 : index
    %c0_12 = arith.constant 0 : index
    %13 = vector.load %arg2[%c1_11, %c0_12] : memref<8x512xf32, #tpu.memory_space<vmem>>, vector<1x512xf32>
    %14 = vector.broadcast %13 : vector<1x512xf32> to vector<16x512xf32>
    %15 = arith.mulf %12, %14 : vector<16x512xf32>
    %16 = arith.truncf %15 : vector<16x512xf32> to vector<16x512xbf16>
    %c16 = arith.constant 16 : index
    %c0_13 = arith.constant 0 : index
    %17 = vector.load %arg7[%c16, %c0_13] : memref<144x512xbf16, #tpu.memory_space<vmem>>, vector<16x512xbf16>
    tpu.vector_store %arg7[%c16, %c0_13], %16 {strides = array<i32>} : memref<144x512xbf16, #tpu.memory_space<vmem>>, vector<16x512xbf16>,
    %c15_i32 = arith.constant 15 : i32
    %18 = tpu.dynamic_rotate %1 by %c15_i32 dim 1 : vector<16x512xf32>, i32 -> vector<16x512xf32>
    %c2_14 = arith.constant 2 : index
    %c0_15 = arith.constant 0 : index
    %19 = vector.load %arg2[%c2_14, %c0_15] : memref<8x512xf32, #tpu.memory_space<vmem>>, vector<1x512xf32>
    %20 = vector.broadcast %19 : vector<1x512xf32> to vector<16x512xf32>
    %21 = arith.mulf %18, %20 : vector<16x512xf32>
    %22 = arith.truncf %21 : vector<16x512xf32> to vector<16x512xbf16>
    %c32 = arith.constant 32 : index
    %c0_16 = arith.constant 0 : index
    %23 = vector.load %arg7[%c32, %c0_16] : memref<144x512xbf16, #tpu.memory_space<vmem>>, vector<16x512xbf16>
    tpu.vector_store %arg7[%c32, %c0_16], %22 {strides = array<i32>} : memref<144x512xbf16, #tpu.memory_space<vmem>>, vector<16x512xbf16>,
    %c1_i32 = arith.constant 1 : i32
    %24 = tpu.dynamic_rotate %1 by %c1_i32 dim 1 : vector<16x512xf32>, i32 -> vector<16x512xf32>
    %c3_17 = arith.constant 3 : index
    %c0_18 = arith.constant 0 : index
    %25 = vector.load %arg2[%c3_17, %c0_18] : memref<8x512xf32, #tpu.memory_space<vmem>>, vector<1x512xf32>
    %26 = vector.broadcast %25 : vector<1x512xf32> to vector<16x512xf32>
    %27 = arith.mulf %24, %26 : vector<16x512xf32>
    %28 = arith.truncf %27 : vector<16x512xf32> to vector<16x512xbf16>
    %c48 = arith.constant 48 : index
    %c0_19 = arith.constant 0 : index
    %29 = vector.load %arg7[%c48, %c0_19] : memref<144x512xbf16, #tpu.memory_space<vmem>>, vector<16x512xbf16>
    tpu.vector_store %arg7[%c48, %c0_19], %28 {strides = array<i32>} : memref<144x512xbf16, #tpu.memory_space<vmem>>, vector<16x512xbf16>,
    %c511_i32 = arith.constant 511 : i32
    %30 = tpu.dynamic_rotate %1 by %c511_i32 dim 1 : vector<16x512xf32>, i32 -> vector<16x512xf32>
    %c4 = arith.constant 4 : index
    %c0_20 = arith.constant 0 : index
    %31 = vector.load %arg2[%c4, %c0_20] : memref<8x512xf32, #tpu.memory_space<vmem>>, vector<1x512xf32>
    %32 = vector.broadcast %31 : vector<1x512xf32> to vector<16x512xf32>
    %33 = arith.mulf %30, %32 : vector<16x512xf32>
    %34 = arith.truncf %33 : vector<16x512xf32> to vector<16x512xbf16>
    %c64 = arith.constant 64 : index
    %c0_21 = arith.constant 0 : index
    %35 = vector.load %arg7[%c64, %c0_21] : memref<144x512xbf16, #tpu.memory_space<vmem>>, vector<16x512xbf16>
    tpu.vector_store %arg7[%c64, %c0_21], %34 {strides = array<i32>} : memref<144x512xbf16, #tpu.memory_space<vmem>>, vector<16x512xbf16>,
    %c497_i32 = arith.constant 497 : i32
    %36 = tpu.dynamic_rotate %1 by %c497_i32 dim 1 : vector<16x512xf32>, i32 -> vector<16x512xf32>
    %c5 = arith.constant 5 : index
    %c0_22 = arith.constant 0 : index
    %37 = vector.load %arg2[%c5, %c0_22] : memref<8x512xf32, #tpu.memory_space<vmem>>, vector<1x512xf32>
    %38 = vector.broadcast %37 : vector<1x512xf32> to vector<16x512xf32>
    %39 = arith.mulf %36, %38 : vector<16x512xf32>
    %40 = arith.truncf %39 : vector<16x512xf32> to vector<16x512xbf16>
    %c80 = arith.constant 80 : index
    %c0_23 = arith.constant 0 : index
    %41 = vector.load %arg7[%c80, %c0_23] : memref<144x512xbf16, #tpu.memory_space<vmem>>, vector<16x512xbf16>
    tpu.vector_store %arg7[%c80, %c0_23], %40 {strides = array<i32>} : memref<144x512xbf16, #tpu.memory_space<vmem>>, vector<16x512xbf16>,
    %c496_i32 = arith.constant 496 : i32
    %42 = tpu.dynamic_rotate %1 by %c496_i32 dim 1 : vector<16x512xf32>, i32 -> vector<16x512xf32>
    %c6 = arith.constant 6 : index
    %c0_24 = arith.constant 0 : index
    %43 = vector.load %arg2[%c6, %c0_24] : memref<8x512xf32, #tpu.memory_space<vmem>>, vector<1x512xf32>
    %44 = vector.broadcast %43 : vector<1x512xf32> to vector<16x512xf32>
    %45 = arith.mulf %42, %44 : vector<16x512xf32>
    %46 = arith.truncf %45 : vector<16x512xf32> to vector<16x512xbf16>
    %c96 = arith.constant 96 : index
    %c0_25 = arith.constant 0 : index
    %47 = vector.load %arg7[%c96, %c0_25] : memref<144x512xbf16, #tpu.memory_space<vmem>>, vector<16x512xbf16>
    tpu.vector_store %arg7[%c96, %c0_25], %46 {strides = array<i32>} : memref<144x512xbf16, #tpu.memory_space<vmem>>, vector<16x512xbf16>,
    %c495_i32 = arith.constant 495 : i32
    %48 = tpu.dynamic_rotate %1 by %c495_i32 dim 1 : vector<16x512xf32>, i32 -> vector<16x512xf32>
    %c7 = arith.constant 7 : index
    %c0_26 = arith.constant 0 : index
    %49 = vector.load %arg2[%c7, %c0_26] : memref<8x512xf32, #tpu.memory_space<vmem>>, vector<1x512xf32>
    %50 = vector.broadcast %49 : vector<1x512xf32> to vector<16x512xf32>
    %51 = arith.mulf %48, %50 : vector<16x512xf32>
    %52 = arith.truncf %51 : vector<16x512xf32> to vector<16x512xbf16>
    %c112 = arith.constant 112 : index
    %c0_27 = arith.constant 0 : index
    %53 = vector.load %arg7[%c112, %c0_27] : memref<144x512xbf16, #tpu.memory_space<vmem>>, vector<16x512xbf16>
    tpu.vector_store %arg7[%c112, %c0_27], %52 {strides = array<i32>} : memref<144x512xbf16, #tpu.memory_space<vmem>>, vector<16x512xbf16>,
    %54 = arith.truncf %1 : vector<16x512xf32> to vector<16x512xbf16>
    %c128 = arith.constant 128 : index
    %c0_28 = arith.constant 0 : index
    %55 = vector.load %arg7[%c128, %c0_28] : memref<144x512xbf16, #tpu.memory_space<vmem>>, vector<16x512xbf16>
    tpu.vector_store %arg7[%c128, %c0_28], %54 {strides = array<i32>} : memref<144x512xbf16, #tpu.memory_space<vmem>>, vector<16x512xbf16>,
    %c0_29 = arith.constant 0 : index
    %c0_30 = arith.constant 0 : index
    %56 = vector.load %arg3[%c0_29, %c0_30] : memref<32x144xbf16, #tpu.memory_space<vmem>>, vector<32x144xbf16>
    %c0_31 = arith.constant 0 : index
    %c0_32 = arith.constant 0 : index
    %57 = vector.load %arg7[%c0_31, %c0_32] : memref<144x512xbf16, #tpu.memory_space<vmem>>, vector<144x512xbf16>
    %cst = arith.constant dense<0.000000e+00> : vector<32x512xf32>
    %58 = tpu.matmul %56, %57, %cst {dimension_numbers = #tpu.dot_dimension_numbers<[1], [0], [0], [1], [0, 0, 1, 1], [], []>} : vector<32x144xbf16>, vector<144x512xbf16>, vector<32x512xf32> -> vector<32x512xf32>
    %59 = vector.broadcast %2 : vector<32x1xf32> to vector<32x512xf32>
    %60 = arith.addf %58, %59 : vector<32x512xf32>
    %cst_33 = arith.constant 0.000000e+00 : f32
    %61 = vector.broadcast %cst_33 : f32 to vector<32x512xf32>
    %62 = arith.maximumf %60, %61 : vector<32x512xf32>
    %63 = vector.extract_strided_slice %62 {offsets = [0, 0], sizes = [16, 512], strides = [1, 1]} : vector<32x512xf32> to vector<16x512xf32>
    %64 = vector.extract_strided_slice %62 {offsets = [16, 0], sizes = [16, 512], strides = [1, 1]} : vector<32x512xf32> to vector<16x512xf32>
    %c17_i32_34 = arith.constant 17 : i32
    %65 = tpu.dynamic_rotate %64 by %c17_i32_34 dim 1 : vector<16x512xf32>, i32 -> vector<16x512xf32>
    %c0_35 = arith.constant 0 : index
    %c0_36 = arith.constant 0 : index
    %66 = vector.load %arg2[%c0_35, %c0_36] : memref<8x512xf32, #tpu.memory_space<vmem>>, vector<1x512xf32>
    %67 = vector.broadcast %66 : vector<1x512xf32> to vector<16x512xf32>
    %68 = arith.mulf %65, %67 : vector<16x512xf32>
    %69 = arith.truncf %68 : vector<16x512xf32> to vector<16x512xbf16>
    %c0_37 = arith.constant 0 : index
    %c0_38 = arith.constant 0 : index
    %70 = vector.load %arg7[%c0_37, %c0_38] : memref<144x512xbf16, #tpu.memory_space<vmem>>, vector<16x512xbf16>
    tpu.vector_store %arg7[%c0_37, %c0_38], %69 {strides = array<i32>} : memref<144x512xbf16, #tpu.memory_space<vmem>>, vector<16x512xbf16>,
    %c16_i32_39 = arith.constant 16 : i32
    %71 = tpu.dynamic_rotate %64 by %c16_i32_39 dim 1 : vector<16x512xf32>, i32 -> vector<16x512xf32>
    %c1_40 = arith.constant 1 : index
    %c0_41 = arith.constant 0 : index
    %72 = vector.load %arg2[%c1_40, %c0_41] : memref<8x512xf32, #tpu.memory_space<vmem>>, vector<1x512xf32>
    %73 = vector.broadcast %72 : vector<1x512xf32> to vector<16x512xf32>
    %74 = arith.mulf %71, %73 : vector<16x512xf32>
    %75 = arith.truncf %74 : vector<16x512xf32> to vector<16x512xbf16>
    %c16_42 = arith.constant 16 : index
    %c0_43 = arith.constant 0 : index
    %76 = vector.load %arg7[%c16_42, %c0_43] : memref<144x512xbf16, #tpu.memory_space<vmem>>, vector<16x512xbf16>
    tpu.vector_store %arg7[%c16_42, %c0_43], %75 {strides = array<i32>} : memref<144x512xbf16, #tpu.memory_space<vmem>>, vector<16x512xbf16>,
    %c15_i32_44 = arith.constant 15 : i32
    %77 = tpu.dynamic_rotate %64 by %c15_i32_44 dim 1 : vector<16x512xf32>, i32 -> vector<16x512xf32>
    %c2_45 = arith.constant 2 : index
    %c0_46 = arith.constant 0 : index
    %78 = vector.load %arg2[%c2_45, %c0_46] : memref<8x512xf32, #tpu.memory_space<vmem>>, vector<1x512xf32>
    %79 = vector.broadcast %78 : vector<1x512xf32> to vector<16x512xf32>
    %80 = arith.mulf %77, %79 : vector<16x512xf32>
    %81 = arith.truncf %80 : vector<16x512xf32> to vector<16x512xbf16>
    %c32_47 = arith.constant 32 : index
    %c0_48 = arith.constant 0 : index
    %82 = vector.load %arg7[%c32_47, %c0_48] : memref<144x512xbf16, #tpu.memory_space<vmem>>, vector<16x512xbf16>
    tpu.vector_store %arg7[%c32_47, %c0_48], %81 {strides = array<i32>} : memref<144x512xbf16, #tpu.memory_space<vmem>>, vector<16x512xbf16>,
    %c1_i32_49 = arith.constant 1 : i32
    %83 = tpu.dynamic_rotate %64 by %c1_i32_49 dim 1 : vector<16x512xf32>, i32 -> vector<16x512xf32>
    %c3_50 = arith.constant 3 : index
    %c0_51 = arith.constant 0 : index
    %84 = vector.load %arg2[%c3_50, %c0_51] : memref<8x512xf32, #tpu.memory_space<vmem>>, vector<1x512xf32>
    %85 = vector.broadcast %84 : vector<1x512xf32> to vector<16x512xf32>
    %86 = arith.mulf %83, %85 : vector<16x512xf32>
    %87 = arith.truncf %86 : vector<16x512xf32> to vector<16x512xbf16>
    %c48_52 = arith.constant 48 : index
    %c0_53 = arith.constant 0 : index
    %88 = vector.load %arg7[%c48_52, %c0_53] : memref<144x512xbf16, #tpu.memory_space<vmem>>, vector<16x512xbf16>
    tpu.vector_store %arg7[%c48_52, %c0_53], %87 {strides = array<i32>} : memref<144x512xbf16, #tpu.memory_space<vmem>>, vector<16x512xbf16>,
    %c511_i32_54 = arith.constant 511 : i32
    %89 = tpu.dynamic_rotate %64 by %c511_i32_54 dim 1 : vector<16x512xf32>, i32 -> vector<16x512xf32>
    %c4_55 = arith.constant 4 : index
    %c0_56 = arith.constant 0 : index
    %90 = vector.load %arg2[%c4_55, %c0_56] : memref<8x512xf32, #tpu.memory_space<vmem>>, vector<1x512xf32>
    %91 = vector.broadcast %90 : vector<1x512xf32> to vector<16x512xf32>
    %92 = arith.mulf %89, %91 : vector<16x512xf32>
    %93 = arith.truncf %92 : vector<16x512xf32> to vector<16x512xbf16>
    %c64_57 = arith.constant 64 : index
    %c0_58 = arith.constant 0 : index
    %94 = vector.load %arg7[%c64_57, %c0_58] : memref<144x512xbf16, #tpu.memory_space<vmem>>, vector<16x512xbf16>
    tpu.vector_store %arg7[%c64_57, %c0_58], %93 {strides = array<i32>} : memref<144x512xbf16, #tpu.memory_space<vmem>>, vector<16x512xbf16>,
    %c497_i32_59 = arith.constant 497 : i32
    %95 = tpu.dynamic_rotate %64 by %c497_i32_59 dim 1 : vector<16x512xf32>, i32 -> vector<16x512xf32>
    %c5_60 = arith.constant 5 : index
    %c0_61 = arith.constant 0 : index
    %96 = vector.load %arg2[%c5_60, %c0_61] : memref<8x512xf32, #tpu.memory_space<vmem>>, vector<1x512xf32>
    %97 = vector.broadcast %96 : vector<1x512xf32> to vector<16x512xf32>
    %98 = arith.mulf %95, %97 : vector<16x512xf32>
    %99 = arith.truncf %98 : vector<16x512xf32> to vector<16x512xbf16>
    %c80_62 = arith.constant 80 : index
    %c0_63 = arith.constant 0 : index
    %100 = vector.load %arg7[%c80_62, %c0_63] : memref<144x512xbf16, #tpu.memory_space<vmem>>, vector<16x512xbf16>
    tpu.vector_store %arg7[%c80_62, %c0_63], %99 {strides = array<i32>} : memref<144x512xbf16, #tpu.memory_space<vmem>>, vector<16x512xbf16>,
    %c496_i32_64 = arith.constant 496 : i32
    %101 = tpu.dynamic_rotate %64 by %c496_i32_64 dim 1 : vector<16x512xf32>, i32 -> vector<16x512xf32>
    %c6_65 = arith.constant 6 : index
    %c0_66 = arith.constant 0 : index
    %102 = vector.load %arg2[%c6_65, %c0_66] : memref<8x512xf32, #tpu.memory_space<vmem>>, vector<1x512xf32>
    %103 = vector.broadcast %102 : vector<1x512xf32> to vector<16x512xf32>
    %104 = arith.mulf %101, %103 : vector<16x512xf32>
    %105 = arith.truncf %104 : vector<16x512xf32> to vector<16x512xbf16>
    %c96_67 = arith.constant 96 : index
    %c0_68 = arith.constant 0 : index
    %106 = vector.load %arg7[%c96_67, %c0_68] : memref<144x512xbf16, #tpu.memory_space<vmem>>, vector<16x512xbf16>
    tpu.vector_store %arg7[%c96_67, %c0_68], %105 {strides = array<i32>} : memref<144x512xbf16, #tpu.memory_space<vmem>>, vector<16x512xbf16>,
    %c495_i32_69 = arith.constant 495 : i32
    %107 = tpu.dynamic_rotate %64 by %c495_i32_69 dim 1 : vector<16x512xf32>, i32 -> vector<16x512xf32>
    %c7_70 = arith.constant 7 : index
    %c0_71 = arith.constant 0 : index
    %108 = vector.load %arg2[%c7_70, %c0_71] : memref<8x512xf32, #tpu.memory_space<vmem>>, vector<1x512xf32>
    %109 = vector.broadcast %108 : vector<1x512xf32> to vector<16x512xf32>
    %110 = arith.mulf %107, %109 : vector<16x512xf32>
    %111 = arith.truncf %110 : vector<16x512xf32> to vector<16x512xbf16>
    %c112_72 = arith.constant 112 : index
    %c0_73 = arith.constant 0 : index
    %112 = vector.load %arg7[%c112_72, %c0_73] : memref<144x512xbf16, #tpu.memory_space<vmem>>, vector<16x512xbf16>
    tpu.vector_store %arg7[%c112_72, %c0_73], %111 {strides = array<i32>} : memref<144x512xbf16, #tpu.memory_space<vmem>>, vector<16x512xbf16>,
    %113 = arith.truncf %64 : vector<16x512xf32> to vector<16x512xbf16>
    %c128_74 = arith.constant 128 : index
    %c0_75 = arith.constant 0 : index
    %114 = vector.load %arg7[%c128_74, %c0_75] : memref<144x512xbf16, #tpu.memory_space<vmem>>, vector<16x512xbf16>
    tpu.vector_store %arg7[%c128_74, %c0_75], %113 {strides = array<i32>} : memref<144x512xbf16, #tpu.memory_space<vmem>>, vector<16x512xbf16>,
    %c0_76 = arith.constant 0 : index
    %c0_77 = arith.constant 0 : index
    %115 = vector.load %arg4[%c0_76, %c0_77] : memref<16x144xbf16, #tpu.memory_space<vmem>>, vector<16x144xbf16>
    %c0_78 = arith.constant 0 : index
    %c0_79 = arith.constant 0 : index
    %116 = vector.load %arg7[%c0_78, %c0_79] : memref<144x512xbf16, #tpu.memory_space<vmem>>, vector<144x512xbf16>
    %cst_80 = arith.constant dense<0.000000e+00> : vector<16x512xf32>
    %117 = tpu.matmul %115, %116, %cst_80 {dimension_numbers = #tpu.dot_dimension_numbers<[1], [0], [0], [1], [0, 0, 1, 1], [], []>} : vector<16x144xbf16>, vector<144x512xbf16>, vector<16x512xf32> -> vector<16x512xf32>
    %118 = vector.broadcast %3 : vector<16x1xf32> to vector<16x512xf32>
    %119 = arith.addf %117, %118 : vector<16x512xf32>
    %120 = vector.extract_strided_slice %119 {offsets = [0, 0], sizes = [16, 256], strides = [1, 1]} : vector<16x512xf32> to vector<16x256xf32>
    %cst_81 = arith.constant dense<0.000000e+00> : vector<16xf32>
    %121 = vector.multi_reduction <add>, %120, %cst_81 [1] : vector<16x256xf32> to vector<16xf32>
    %122 = vector.shape_cast %121 : vector<16xf32> to vector<16x1xf32>
    %cst_82 = arith.constant 3.906250e-03 : f32
    %123 = vector.broadcast %cst_82 : f32 to vector<16x1xf32>
    %124 = arith.mulf %122, %123 : vector<16x1xf32>
    %125 = arith.mulf %4, %124 : vector<16x1xf32>
    %cst_83 = arith.constant dense<0.000000e+00> : vector<1xf32>
    %126 = vector.multi_reduction <add>, %125, %cst_83 [0] : vector<16x1xf32> to vector<1xf32>
    %127 = vector.shape_cast %126 : vector<1xf32> to vector<1x1xf32>
    %cst_84 = arith.constant 0.000000e+00 : f32
    %128 = vector.broadcast %cst_84 : f32 to vector<1x1xf32>
    %129 = arith.maximumf %127, %128 : vector<1x1xf32>
    %130 = vector.broadcast %129 : vector<1x1xf32> to vector<16x1xf32>
    %131 = arith.mulf %5, %130 : vector<16x1xf32>
    %cst_85 = arith.constant dense<0.000000e+00> : vector<16xf32>
    %132 = vector.multi_reduction <add>, %131, %cst_85 [1] : vector<16x1xf32> to vector<16xf32>
    %133 = vector.shape_cast %132 : vector<16xf32> to vector<16x1xf32>
    %134 = arith.negf %133 : vector<16x1xf32>
    %135 = math.exp %134 : vector<16x1xf32>
    %cst_86 = arith.constant 1.000000e+00 : f32
    %136 = vector.broadcast %cst_86 : f32 to vector<16x1xf32>
    %137 = arith.addf %136, %135 : vector<16x1xf32>
    %138 = arith.divf %136, %137 : vector<16x1xf32>
    %139 = vector.broadcast %138 : vector<16x1xf32> to vector<16x256xf32>
    %140 = arith.mulf %120, %139 : vector<16x256xf32>
    %141 = vector.extract_strided_slice %63 {offsets = [0, 0], sizes = [16, 256], strides = [1, 1]} : vector<16x512xf32> to vector<16x256xf32>
    %142 = arith.addf %140, %141 : vector<16x256xf32>
    %cst_87 = arith.constant 0.000000e+00 : f32
    %143 = vector.broadcast %cst_87 : f32 to vector<16x256xf32>
    %144 = arith.maximumf %142, %143 : vector<16x256xf32>
    %c0_88 = arith.constant 0 : index
    %c0_89 = arith.constant 0 : index
    %c0_90 = arith.constant 0 : index
    %145 = vector.load %arg6[%c0_88, %c0_89, %c0_90] : memref<1x16x512xf32, #tpu.memory_space<vmem>>, vector<1x16x256xf32>
    %146 = vector.shape_cast %145 : vector<1x16x256xf32> to vector<16x256xf32>
    %147 = vector.shape_cast %144 : vector<16x256xf32> to vector<1x16x256xf32>
    tpu.vector_store %arg6[%c0_88, %c0_89, %c0_90], %147 {strides = array<i32>} : memref<1x16x512xf32, #tpu.memory_space<vmem>>, vector<1x16x256xf32>,
    %148 = vector.extract_strided_slice %119 {offsets = [0, 256], sizes = [16, 256], strides = [1, 1]} : vector<16x512xf32> to vector<16x256xf32>
    %cst_91 = arith.constant dense<0.000000e+00> : vector<16xf32>
    %149 = vector.multi_reduction <add>, %148, %cst_91 [1] : vector<16x256xf32> to vector<16xf32>
    %150 = vector.shape_cast %149 : vector<16xf32> to vector<16x1xf32>
    %cst_92 = arith.constant 3.906250e-03 : f32
    %151 = vector.broadcast %cst_92 : f32 to vector<16x1xf32>
    %152 = arith.mulf %150, %151 : vector<16x1xf32>
    %153 = arith.mulf %4, %152 : vector<16x1xf32>
    %cst_93 = arith.constant dense<0.000000e+00> : vector<1xf32>
    %154 = vector.multi_reduction <add>, %153, %cst_93 [0] : vector<16x1xf32> to vector<1xf32>
    %155 = vector.shape_cast %154 : vector<1xf32> to vector<1x1xf32>
    %cst_94 = arith.constant 0.000000e+00 : f32
    %156 = vector.broadcast %cst_94 : f32 to vector<1x1xf32>
    %157 = arith.maximumf %155, %156 : vector<1x1xf32>
    %158 = vector.broadcast %157 : vector<1x1xf32> to vector<16x1xf32>
    %159 = arith.mulf %5, %158 : vector<16x1xf32>
    %cst_95 = arith.constant dense<0.000000e+00> : vector<16xf32>
    %160 = vector.multi_reduction <add>, %159, %cst_95 [1] : vector<16x1xf32> to vector<16xf32>
    %161 = vector.shape_cast %160 : vector<16xf32> to vector<16x1xf32>
    %162 = arith.negf %161 : vector<16x1xf32>
    %163 = math.exp %162 : vector<16x1xf32>
    %cst_96 = arith.constant 1.000000e+00 : f32
    %164 = vector.broadcast %cst_96 : f32 to vector<16x1xf32>
    %165 = arith.addf %164, %163 : vector<16x1xf32>
    %166 = arith.divf %164, %165 : vector<16x1xf32>
    %167 = vector.broadcast %166 : vector<16x1xf32> to vector<16x256xf32>
    %168 = arith.mulf %148, %167 : vector<16x256xf32>
    %169 = vector.extract_strided_slice %63 {offsets = [0, 256], sizes = [16, 256], strides = [1, 1]} : vector<16x512xf32> to vector<16x256xf32>
    %170 = arith.addf %168, %169 : vector<16x256xf32>
    %cst_97 = arith.constant 0.000000e+00 : f32
    %171 = vector.broadcast %cst_97 : f32 to vector<16x256xf32>
    %172 = arith.maximumf %170, %171 : vector<16x256xf32>
    %c0_98 = arith.constant 0 : index
    %c0_99 = arith.constant 0 : index
    %c256 = arith.constant 256 : index
    %173 = vector.load %arg6[%c0_98, %c0_99, %c256] : memref<1x16x512xf32, #tpu.memory_space<vmem>>, vector<1x16x256xf32>
    %174 = vector.shape_cast %173 : vector<1x16x256xf32> to vector<16x256xf32>
    %175 = vector.shape_cast %172 : vector<16x256xf32> to vector<1x16x256xf32>
    tpu.vector_store %arg6[%c0_98, %c0_99, %c256], %175 {strides = array<i32>} : memref<1x16x512xf32, #tpu.memory_space<vmem>>, vector<1x16x256xf32>,
    return
  }
  func.func @transform_0(%arg0: i32) -> (i32, i32, i32) {
    %c0_i32 = arith.constant 0 : i32
    %c0_i32_0 = arith.constant 0 : i32
    %c0_i32_1 = arith.constant 0 : i32
    return %arg0, %c0_i32, %c0_i32_0 : i32, i32, i32
  }
  func.func @transform_1(%arg0: i32) -> (i32, i32) {
    %c0_i32 = arith.constant 0 : i32
    %c0_i32_0 = arith.constant 0 : i32
    %c0_i32_1 = arith.constant 0 : i32
    return %c0_i32, %c0_i32_0 : i32, i32
  }
  func.func @transform_2(%arg0: i32) -> (i32, i32) {
    %c0_i32 = arith.constant 0 : i32
    %c0_i32_0 = arith.constant 0 : i32
    %c0_i32_1 = arith.constant 0 : i32
    return %c0_i32, %c0_i32_0 : i32, i32
  }
  func.func @transform_3(%arg0: i32) -> (i32, i32) {
    %c0_i32 = arith.constant 0 : i32
    %c0_i32_0 = arith.constant 0 : i32
    %c0_i32_1 = arith.constant 0 : i32
    return %c0_i32, %c0_i32_0 : i32, i32
  }
  func.func @transform_4(%arg0: i32) -> (i32, i32) {
    %c0_i32 = arith.constant 0 : i32
    %c0_i32_0 = arith.constant 0 : i32
    %c0_i32_1 = arith.constant 0 : i32
    return %c0_i32, %c0_i32_0 : i32, i32
  }
  func.func @transform_5(%arg0: i32) -> (i32, i32, i32) {
    %c0_i32 = arith.constant 0 : i32
    %c0_i32_0 = arith.constant 0 : i32
    %c0_i32_1 = arith.constant 0 : i32
    return %arg0, %c0_i32, %c0_i32_0 : i32, i32, i32
  }
}

</mosaic_0001>

<bundles_post_ra>
// kernel: block2_forward.1
= control target key start
LH: loop header
LB: loop body
LE: loop exit
PB: predicated region body
PF: predicated region fallthrough
CT: control target
= control target key end

     0   :  { %s1945_s18 = smov 0   ;;  %s2916_s0 = inlined_call_operand.vmem [shape: f32[2,16,512], index: 0, kind: input, shape index: {}]   ;;  %s2917_s1 = inlined_call_operand.vmem [shape: f32[8,512], index: 1, kind: input, shape index: {}]   ;;  %s2918_s2 = inlined_call_operand.vmem [shape: bf16[32,144], index: 2, kind: input, shape index: {}]   ;;  %s2919_s3 = inlined_call_operand.vmem [shape: bf16[16,144], index: 3, kind: input, shape index: {}]   ;;  %s2920_s4 = inlined_call_operand.vmem [shape: f32[32,4], index: 4, kind: input, shape index: {}]   ;;  %s2921_s5 = inlined_call_operand.vmem [shape: f32[2,16,512], index: 5, kind: output, shape index: {}]  }
   0x1 LB: > { %s1802_s19 = sadd.s32 4294967295, %s1902_s18   ;;  %p1806_p0 = scmp.ge.s32.totalorder %s1902_s18, 1  ;;  %s1902_s18 = sphi %s1945_s18, %s15_s18  }
   0x2   : > { %p187_p1 = scmp.lt.s32.totalorder %s1902_s18, 3 }
   0x4   : > { %p188_p2 = pnand %p1806_p0, %p187_p1 }
   0x6   : > { %191 = sbr.rel (%p188_p2) target bundleno = 1407 (0x57f), region = 40 }
   0xd   : > { %p215_p3 = scmp.lt.s32.totalorder %s1802_s19, 1  ;;  %s1904_s24 = smov 17   ;;  %v254_v8 = vlaneseq  ;;  %v265_v12 = vld [vmem:[%s2917_s1] ss:$8 sm:$0xf]  ;;  %vm837_vm1 = vcmask 130048  }
   0xe   : > { %s1905_s25 = smov 16   ;;  %s1906_s26 = smov 15   ;;  %v1873_v17 = vld [vmem:[%s2918_s2 + $0x4] ss:$8 sps:$4 sm:$0xff]   ;;  %v236_v53 = vld [vmem:[%s2920_s4 + $0x10] sm:$0xff]  ;;  %v237_v54 = vld [vmem:[%s2920_s4 + $0x18] sm:$0xff] }
   0xf   : > { %s2952_s19 = smov (!%p215_p3, %s1802_s19), 1  ;;  %s1907_s27 = smov 1   ;;  %v268_v9 = vshrl.u32 %v254_v8, 7  ;;  %v2089_v10 = vand.u32 127, %v254_v8  ;;  %1822 = vmatprep.mubr.msk.bf16.mxu0 %vm837_vm1, %v1873_v17  ;;  %1824 = vmatprep.mubr.msk.bf16.mxu1 %vm837_vm1, %v1873_v17  ;;  %v1912_v55 = vmov 0   ;;  %vm1624_vm9 = vcmask 23568  }
  0x10   : > { %s1843_s20 = sshll.u32 %s2952_s19, 6  ;;  %s1908_s28 = smov 127   ;;  %v1811_v46 = vld [vmem:[%s2917_s1 + $0x1] ss:$8 sm:$0xf]  ;;  %1864 = vset.pattern.permute.xlu0 %v1912_v55  ;;  %1865 = vset.pattern.permute.xlu1 %v1912_v55 }
  0x11   : > { %s219_s23 = scalar_lea.vmem %s2916_s0, %s1843_s20  ;;  %s1909_s29 = smov 113   ;;  %v2095_v11 = vsub.s32 1, %v268_v9  ;;  %vm256_vm0 = vcmp.lt.s32.totalorder %v2089_v10, 17  ;;  %v2111_v20 = vsub.s32 2, %v268_v9  ;;  %v2121_v22 = vsub.s32 0, %v268_v9 }
  0x12   : > { %v1961_v0 = vld [vmem:[%s219_s23 + $0x8] sm:$0xff]  ;;  %v1963_v1 = vld [vmem:[%s219_s23] sm:$0xff]  ;;  %v1977_v4 = vld [vmem:[%s219_s23 + $0x30] sm:$0xff]  ;;  %s1910_s30 = smov 112   ;;  %s1911_s6 = smov 111   ;;  %v2123_v23 = vsub.s32 3, %v268_v9 }
  0x13   : > { %242 = vrot.lane.b32.xlu1 %v1961_v0, %s1904_s24  ;;  %238 = vrot.lane.b32.xlu0 %v1963_v1, %s1904_s24  ;;  %v1969_v2 = vld [vmem:[%s219_s23 + $0x28] sm:$0xff]  ;;  %v1971_v3 = vld [vmem:[%s219_s23 + $0x20] sm:$0xff]  ;;  %v274_v15 = vrot.slane %v265_v12, %v2095_v11  ;;  %v278_v29 = vrot.slane %v265_v12, %v2111_v20  ;;  %v270_v32 = vrot.slane %v265_v12, %v2121_v22  ;;  %vm319_vm2 = vcmp.lt.s32.totalorder %v2089_v10, 16 }
  0x14   : > { %v1979_v5 = vld [vmem:[%s219_s23 + $0x10] sm:$0xff]  ;;  %v1985_v6 = vld [vmem:[%s219_s23 + $0x38] sm:$0xff]  ;;  %v282_v33 = vrot.slane %v265_v12, %v2123_v23  ;;  %v338_v52 = vrot.slane %v1811_v46, %v2095_v11  ;;  %v342_v62 = vrot.slane %v1811_v46, %v2111_v20  ;;  %vm383_vm3 = vcmp.lt.s32.totalorder %v2089_v10, 15 }
  0x15   : > { %v1987_v7 = vld [vmem:[%s219_s23 + $0x18] sm:$0xff]  ;;  %vm447_vm4 = vcmp.lt.s32.totalorder %v2089_v10, 1  ;;  %vm511_vm5 = vcmp.lt.s32.totalorder %v2089_v10, 127  ;;  %vm575_vm6 = vcmp.lt.s32.totalorder %v2089_v10, 113  ;;  %vm639_vm7 = vcmp.lt.s32.totalorder %v2089_v10, 112 }
  0x16   : > { %vm703_vm8 = vcmp.lt.s32.totalorder %v2089_v10, 111  ;;  %v1877_v10 = vld [vmem:[%s2919_s3] ss:$8 sps:$4 sm:$0xff]  }
  0x17   : > { %244 = vrot.lane.b32.xlu1 %v1969_v2, %s1904_s24  ;;  %240 = vrot.lane.b32.xlu0 %v1971_v3, %s1904_s24 }
  0x1b   : > { %248 = vrot.lane.b32.xlu1 %v1977_v4, %s1904_s24  ;;  %246 = vrot.lane.b32.xlu0 %v1979_v5, %s1904_s24 }
  0x1f   : > { %252 = vrot.lane.b32.xlu1 %v1985_v6, %s1904_s24  ;;  %250 = vrot.lane.b32.xlu0 %v1987_v7, %s1904_s24 }
  0x23   : > { %305 = vrot.lane.b32.xlu1 %v1971_v3, %s1905_s25  ;;  %303 = vrot.lane.b32.xlu0 %v1963_v1, %s1905_s25 }
  0x27   : > { %309 = vrot.lane.b32.xlu1 %v1969_v2, %s1905_s25  ;;  %307 = vrot.lane.b32.xlu0 %v1961_v0, %s1905_s25 }
  0x2b   : > { %313 = vrot.lane.b32.xlu1 %v1977_v4, %s1905_s25  ;;  %311 = vrot.lane.b32.xlu0 %v1979_v5, %s1905_s25 }
  0x2f   : > { %317 = vrot.lane.b32.xlu1 %v1985_v6, %s1905_s25  ;;  %315 = vrot.lane.b32.xlu0 %v1987_v7, %s1905_s25 }
  0x33   : > { %369 = vrot.lane.b32.xlu1 %v1971_v3, %s1906_s26  ;;  %367 = vrot.lane.b32.xlu0 %v1963_v1, %s1906_s26 }
  0x37   : > { %373 = vrot.lane.b32.xlu1 %v1969_v2, %s1906_s26  ;;  %371 = vrot.lane.b32.xlu0 %v1961_v0, %s1906_s26 }
  0x3b   : > { %377 = vrot.lane.b32.xlu1 %v1977_v4, %s1906_s26  ;;  %375 = vrot.lane.b32.xlu0 %v1979_v5, %s1906_s26 }
  0x3f   : > { %381 = vrot.lane.b32.xlu1 %v1985_v6, %s1906_s26  ;;  %379 = vrot.lane.b32.xlu0 %v1987_v7, %s1906_s26 }
  0x43   : > { %433 = vrot.lane.b32.xlu1 %v1971_v3, %s1907_s27  ;;  %431 = vrot.lane.b32.xlu0 %v1963_v1, %s1907_s27 }
  0x47   : > { %437 = vrot.lane.b32.xlu1 %v1969_v2, %s1907_s27  ;;  %435 = vrot.lane.b32.xlu0 %v1961_v0, %s1907_s27 }
  0x4b   : > { %441 = vrot.lane.b32.xlu1 %v1977_v4, %s1907_s27  ;;  %439 = vrot.lane.b32.xlu0 %v1979_v5, %s1907_s27 }
  0x4f   : > { %445 = vrot.lane.b32.xlu1 %v1985_v6, %s1907_s27  ;;  %443 = vrot.lane.b32.xlu0 %v1987_v7, %s1907_s27 }
  0x53   : > { %497 = vrot.lane.b32.xlu1 %v1971_v3, %s1908_s28  ;;  %495 = vrot.lane.b32.xlu0 %v1963_v1, %s1908_s28 }
  0x57   : > { %501 = vrot.lane.b32.xlu1 %v1969_v2, %s1908_s28  ;;  %499 = vrot.lane.b32.xlu0 %v1961_v0, %s1908_s28 }
  0x5b   : > { %505 = vrot.lane.b32.xlu1 %v1977_v4, %s1908_s28  ;;  %503 = vrot.lane.b32.xlu0 %v1979_v5, %s1908_s28 }
  0x5f   : > { %509 = vrot.lane.b32.xlu1 %v1985_v6, %s1908_s28  ;;  %507 = vrot.lane.b32.xlu0 %v1987_v7, %s1908_s28 }
  0x63   : > { %561 = vrot.lane.b32.xlu1 %v1971_v3, %s1909_s29  ;;  %559 = vrot.lane.b32.xlu0 %v1963_v1, %s1909_s29 }
  0x67   : > { %565 = vrot.lane.b32.xlu1 %v1969_v2, %s1909_s29  ;;  %563 = vrot.lane.b32.xlu0 %v1961_v0, %s1909_s29 }
  0x6b   : > { %569 = vrot.lane.b32.xlu1 %v1977_v4, %s1909_s29  ;;  %567 = vrot.lane.b32.xlu0 %v1979_v5, %s1909_s29 }
  0x6f   : > { %573 = vrot.lane.b32.xlu1 %v1985_v6, %s1909_s29  ;;  %571 = vrot.lane.b32.xlu0 %v1987_v7, %s1909_s29 }
  0x73   : > { %625 = vrot.lane.b32.xlu1 %v1971_v3, %s1910_s30  ;;  %623 = vrot.lane.b32.xlu0 %v1963_v1, %s1910_s30 }
  0x77   : > { %629 = vrot.lane.b32.xlu1 %v1969_v2, %s1910_s30  ;;  %627 = vrot.lane.b32.xlu0 %v1961_v0, %s1910_s30 }
  0x7b   : > { %633 = vrot.lane.b32.xlu1 %v1977_v4, %s1910_s30  ;;  %631 = vrot.lane.b32.xlu0 %v1979_v5, %s1910_s30 }
  0x7f   : > { %637 = vrot.lane.b32.xlu1 %v1985_v6, %s1910_s30  ;;  %635 = vrot.lane.b32.xlu0 %v1987_v7, %s1910_s30 }
  0x83   : > { %689 = vrot.lane.b32.xlu1 %v1971_v3, %s1911_s6  ;;  %687 = vrot.lane.b32.xlu0 %v1963_v1, %s1911_s6 }
  0x85   : > { %v243_v13 = vpop.permute.xlu1 %242  ;;  %v239_v14 = vpop.permute.xlu0 %238 }
  0x86   : > { %v261_v16 = vsel %vm256_vm0, %v239_v14, %v243_v13 }
  0x87   : > { %693 = vrot.lane.b32.xlu1 %v1969_v2, %s1911_s6  ;;  %691 = vrot.lane.b32.xlu0 %v1961_v0, %s1911_s6  ;;  %v288_v24 = vmul.f32 %v274_v15, %v261_v16 }
  0x89   : > { %v245_v18 = vpop.permute.xlu1 %244  ;;  %v241_v19 = vpop.permute.xlu0 %240 }
  0x8a   : > { %v262_v21 = vsel %vm256_vm0, %v241_v19, %v245_v18 }
  0x8b   : > { %697 = vrot.lane.b32.xlu1 %v1977_v4, %s1911_s6  ;;  %695 = vrot.lane.b32.xlu0 %v1979_v5, %s1911_s6  ;;  %v292_v25 = vmul.f32 %v274_v15, %v262_v21  ;;  %v346_v15 = vrot.slane %v1811_v46, %v2123_v23 }
  0x8d   : > { %v249_v26 = vpop.permute.xlu1 %248  ;;  %v247_v27 = vpop.permute.xlu0 %246  ;;  %v296_v28 = vpack.c.bf16 %v292_v25, %v288_v24 }
  0x8e   : > { %v260_v30 = vsel %vm256_vm0, %v245_v18, %v249_v26  ;;  %v259_v31 = vsel %vm256_vm0, %v243_v13, %v247_v27 }
  0x8f   : > { %701 = vrot.lane.b32.xlu1 %v1985_v6, %s1911_s6  ;;  %699 = vrot.lane.b32.xlu0 %v1987_v7, %s1911_s6  ;;  %v289_v36 = vmul.f32 %v278_v29, %v259_v31  ;;  %v293_v37 = vmul.f32 %v278_v29, %v260_v30  ;;  %v1812_v31 = vld [vmem:[%s2917_s1 + $0x2] ss:$8 sm:$0xf] }
  0x90   : > { %844 = vmatprep.subr.bf16.mxu0 %v296_v28 }
  0x91   : > { %v253_v34 = vpop.permute.xlu1 %252  ;;  %v251_v35 = vpop.permute.xlu0 %250  ;;  %v297_v51 = vpack.c.bf16 %v293_v37, %v289_v36  ;;  %v402_v37 = vrot.slane %v1812_v31, %v2095_v11 }
  0x92   : > { %v264_v38 = vsel %vm256_vm0, %v253_v34, %v241_v19  ;;  %v263_v39 = vsel %vm256_vm0, %v251_v35, %v239_v14  ;;  %v257_v40 = vsel %vm256_vm0, %v247_v27, %v251_v35  ;;  %v258_v41 = vsel %vm256_vm0, %v249_v26, %v253_v34 }
  0x93   : > { %v287_v42 = vmul.f32 %v270_v32, %v263_v39  ;;  %v291_v43 = vmul.f32 %v270_v32, %v264_v38  ;;  %v290_v44 = vmul.f32 %v282_v33, %v257_v40  ;;  %v294_v45 = vmul.f32 %v282_v33, %v258_v41  ;;  %811 = vperm.xlu0 %1864, %v236_v53  }
  0x94   : > { %816 = vperm.xlu1 %1865, %v237_v54   ;;  %v334_v14 = vrot.slane %v1811_v46, %v2121_v22 }
  0x95   : > { %v306_v47 = vpop.permute.xlu1 %305  ;;  %v304_v48 = vpop.permute.xlu0 %303  ;;  %v295_v49 = vpack.c.bf16 %v291_v43, %v287_v42  ;;  %v298_v50 = vpack.c.bf16 %v294_v45, %v290_v44  ;;  %v406_v44 = vrot.slane %v1812_v31, %v2111_v20 }
  0x97   : > { %845 = vmatpush1.bf16.msra.mxu0 %v295_v49  ;;  %897 = vmatprep.subr.bf16.mxu1 %v298_v50  ;;  %v398_v50 = vrot.slane %v1812_v31, %v2121_v22 }
  0x98   : > { %898 = vmatpush1.bf16.msra.mxu1 %v297_v51  ;;  %v410_v51 = vrot.slane %v1812_v31, %v2123_v23 }
  0x99   : > { %v310_v56 = vpop.permute.xlu1 %309  ;;  %v308_v57 = vpop.permute.xlu0 %307 }
  0x9a   : > { %v325_v58 = vsel %vm319_vm2, %v306_v47, %v310_v56  ;;  %v324_v59 = vsel %vm319_vm2, %v304_v48, %v308_v57 }
  0x9b   : > { %v356_v60 = vmul.f32 %v338_v52, %v325_v58  ;;  %v352_v61 = vmul.f32 %v338_v52, %v324_v59 }
  0x9d   : > { %v314_v63 = vpop.permute.xlu1 %313  ;;  %v312_v8 = vpop.permute.xlu0 %311  ;;  %v360_v9 = vpack.c.bf16 %v356_v60, %v352_v61 }
  0x9e   : > { %v323_v12 = vsel %vm319_vm2, %v310_v56, %v314_v63  ;;  %v322_v13 = vsel %vm319_vm2, %v308_v57, %v312_v8 }
  0x9f   : > { %846 = vmatprep.subr.bf16.mxu0 %v360_v9  ;;  %v357_v16 = vmul.f32 %v342_v62, %v323_v12  ;;  %v353_v17 = vmul.f32 %v342_v62, %v322_v13  ;;  %v1813_v9 = vld [vmem:[%s2917_s1 + $0x3] ss:$8 sm:$0xf] }
  0xa1   : > { %v318_v18 = vpop.permute.xlu1 %317  ;;  %v316_v19 = vpop.permute.xlu0 %315  ;;  %v361_v36 = vpack.c.bf16 %v357_v16, %v353_v17  ;;  %v466_v17 = vrot.slane %v1813_v9, %v2095_v11 }
  0xa2   : > { %v321_v21 = vsel %vm319_vm2, %v314_v63, %v318_v18  ;;  %v327_v24 = vsel %vm319_vm2, %v318_v18, %v306_v47  ;;  %v320_v25 = vsel %vm319_vm2, %v312_v8, %v316_v19  ;;  %v326_v26 = vsel %vm319_vm2, %v316_v19, %v304_v48 }
  0xa3   : > { %v355_v27 = vmul.f32 %v334_v14, %v327_v24  ;;  %v358_v28 = vmul.f32 %v346_v15, %v321_v21  ;;  %v351_v29 = vmul.f32 %v334_v14, %v326_v26  ;;  %v354_v30 = vmul.f32 %v346_v15, %v320_v25 }
  0xa5   : > { %v370_v32 = vpop.permute.xlu1 %369  ;;  %v368_v33 = vpop.permute.xlu0 %367  ;;  %v359_v34 = vpack.c.bf16 %v355_v27, %v351_v29  ;;  %v362_v35 = vpack.c.bf16 %v358_v28, %v354_v30  ;;  %v470_v27 = vrot.slane %v1813_v9, %v2111_v20 }
  0xa7   : > { %847 = vmatpush1.bf16.msra.mxu0 %v359_v34  ;;  %899 = vmatprep.subr.bf16.mxu1 %v362_v35  ;;  %v474_v34 = vrot.slane %v1813_v9, %v2123_v23 }
  0xa8   : > { %900 = vmatpush1.bf16.msra.mxu1 %v361_v36 }
  0xa9   : > { %v374_v38 = vpop.permute.xlu1 %373  ;;  %v372_v39 = vpop.permute.xlu0 %371 }
  0xaa   : > { %v389_v40 = vsel %vm383_vm3, %v370_v32, %v374_v38  ;;  %v388_v41 = vsel %vm383_vm3, %v368_v33, %v372_v39 }
  0xab   : > { %v420_v42 = vmul.f32 %v402_v37, %v389_v40  ;;  %v416_v43 = vmul.f32 %v402_v37, %v388_v41 }
  0xad   : > { %v378_v45 = vpop.permute.xlu1 %377  ;;  %v376_v46 = vpop.permute.xlu0 %375  ;;  %v424_v47 = vpack.c.bf16 %v420_v42, %v416_v43 }
  0xae   : > { %v387_v48 = vsel %vm383_vm3, %v374_v38, %v378_v45  ;;  %v386_v49 = vsel %vm383_vm3, %v372_v39, %v376_v46 }
  0xaf   : > { %848 = vmatprep.subr.bf16.mxu0 %v424_v47  ;;  %v421_v52 = vmul.f32 %v406_v44, %v387_v48  ;;  %v417_v53 = vmul.f32 %v406_v44, %v386_v49 }
  0xb1   : > { %v382_v54 = vpop.permute.xlu1 %381  ;;  %v380_v56 = vpop.permute.xlu0 %379  ;;  %v425_v16 = vpack.c.bf16 %v421_v52, %v417_v53  ;;  %v1814_v52 = vld [vmem:[%s2917_s1 + $0x4] ss:$8 sm:$0xf] }
  0xb2   : > { %v385_v57 = vsel %vm383_vm3, %v378_v45, %v382_v54  ;;  %v391_v58 = vsel %vm383_vm3, %v382_v54, %v370_v32  ;;  %v384_v59 = vsel %vm383_vm3, %v376_v46, %v380_v56  ;;  %v390_v60 = vsel %vm383_vm3, %v380_v56, %v368_v33 }
  0xb3   : > { %v419_v61 = vmul.f32 %v398_v50, %v391_v58  ;;  %v422_v62 = vmul.f32 %v410_v51, %v385_v57  ;;  %v415_v63 = vmul.f32 %v398_v50, %v390_v60  ;;  %v418_v8 = vmul.f32 %v410_v51, %v384_v59 }
  0xb4   : > { %v462_v33 = vrot.slane %v1813_v9, %v2121_v22  ;;  %v526_v53 = vrot.slane %v1814_v52, %v2121_v22  ;;  %v530_v59 = vrot.slane %v1814_v52, %v2095_v11 }
  0xb5   : > { %v434_v12 = vpop.permute.xlu1 %433  ;;  %v432_v13 = vpop.permute.xlu0 %431  ;;  %v423_v14 = vpack.c.bf16 %v419_v61, %v415_v63  ;;  %v426_v15 = vpack.c.bf16 %v422_v62, %v418_v8 }
  0xb7   : > { %849 = vmatpush1.bf16.msra.mxu0 %v423_v14  ;;  %901 = vmatprep.subr.bf16.mxu1 %v426_v15  ;;  %v534_v14 = vrot.slane %v1814_v52, %v2111_v20  ;;  %v538_v15 = vrot.slane %v1814_v52, %v2123_v23 }
  0xb8   : > { %902 = vmatpush1.bf16.msra.mxu1 %v425_v16 }
  0xb9   : > { %v438_v18 = vpop.permute.xlu1 %437  ;;  %v436_v19 = vpop.permute.xlu0 %435 }
  0xba   : > { %v453_v21 = vsel %vm447_vm4, %v434_v12, %v438_v18  ;;  %v452_v24 = vsel %vm447_vm4, %v432_v13, %v436_v19 }
  0xbb   : > { %v484_v25 = vmul.f32 %v466_v17, %v453_v21  ;;  %v480_v26 = vmul.f32 %v466_v17, %v452_v24 }
  0xbd   : > { %v442_v28 = vpop.permute.xlu1 %441  ;;  %v440_v29 = vpop.permute.xlu0 %439  ;;  %v488_v30 = vpack.c.bf16 %v484_v25, %v480_v26 }
  0xbe   : > { %v451_v31 = vsel %vm447_vm4, %v438_v18, %v442_v28  ;;  %v450_v32 = vsel %vm447_vm4, %v436_v19, %v440_v29 }
  0xbf   : > { %850 = vmatprep.subr.bf16.mxu0 %v488_v30  ;;  %v485_v35 = vmul.f32 %v470_v27, %v451_v31  ;;  %v481_v36 = vmul.f32 %v470_v27, %v450_v32 }
  0xc1   : > { %v446_v37 = vpop.permute.xlu1 %445  ;;  %v444_v38 = vpop.permute.xlu0 %443  ;;  %v489_v51 = vpack.c.bf16 %v485_v35, %v481_v36  ;;  %v1815_v35 = vld [vmem:[%s2917_s1 + $0x5] ss:$8 sm:$0xf] }
  0xc2   : > { %v449_v39 = vsel %vm447_vm4, %v442_v28, %v446_v37  ;;  %v455_v40 = vsel %vm447_vm4, %v446_v37, %v434_v12  ;;  %v448_v41 = vsel %vm447_vm4, %v440_v29, %v444_v38  ;;  %v454_v42 = vsel %vm447_vm4, %v444_v38, %v432_v13 }
  0xc3   : > { %v483_v43 = vmul.f32 %v462_v33, %v455_v40  ;;  %v486_v44 = vmul.f32 %v474_v34, %v449_v39  ;;  %v479_v45 = vmul.f32 %v462_v33, %v454_v42  ;;  %v482_v46 = vmul.f32 %v474_v34, %v448_v41 }
  0xc4   : > { %v590_v36 = vrot.slane %v1815_v35, %v2121_v22  ;;  %v594_v41 = vrot.slane %v1815_v35, %v2095_v11 }
  0xc5   : > { %v498_v47 = vpop.permute.xlu1 %497  ;;  %v496_v48 = vpop.permute.xlu0 %495  ;;  %v487_v49 = vpack.c.bf16 %v483_v43, %v479_v45  ;;  %v490_v50 = vpack.c.bf16 %v486_v44, %v482_v46 }
  0xc7   : > { %851 = vmatpush1.bf16.msra.mxu0 %v487_v49  ;;  %903 = vmatprep.subr.bf16.mxu1 %v490_v50  ;;  %v598_v50 = vrot.slane %v1815_v35, %v2111_v20 }
  0xc8   : > { %904 = vmatpush1.bf16.msra.mxu1 %v489_v51  ;;  %v602_v51 = vrot.slane %v1815_v35, %v2123_v23 }
  0xc9   : > { %v502_v54 = vpop.permute.xlu1 %501  ;;  %v500_v56 = vpop.permute.xlu0 %499 }
  0xca   : > { %v517_v57 = vsel %vm511_vm5, %v498_v47, %v502_v54  ;;  %v516_v58 = vsel %vm511_vm5, %v496_v48, %v500_v56 }
  0xcb   : > { %v547_v60 = vmul.f32 %v526_v53, %v517_v57  ;;  %v543_v61 = vmul.f32 %v526_v53, %v516_v58 }
  0xcd   : > { %v506_v62 = vpop.permute.xlu1 %505  ;;  %v504_v63 = vpop.permute.xlu0 %503  ;;  %v551_v19 = vpack.c.bf16 %v547_v60, %v543_v61 }
  0xce   : > { %v515_v8 = vsel %vm511_vm5, %v502_v54, %v506_v62  ;;  %v514_v9 = vsel %vm511_vm5, %v500_v56, %v504_v63 }
  0xcf   : > { %v548_v12 = vmul.f32 %v530_v59, %v515_v8  ;;  %v544_v13 = vmul.f32 %v530_v59, %v514_v9 }
  0xd1   : > { %v510_v16 = vpop.permute.xlu1 %509  ;;  %v508_v17 = vpop.permute.xlu0 %507  ;;  %v552_v18 = vpack.c.bf16 %v548_v12, %v544_v13 }
  0xd2   : > { %v513_v21 = vsel %vm511_vm5, %v506_v62, %v510_v16  ;;  %v519_v24 = vsel %vm511_vm5, %v510_v16, %v498_v47  ;;  %v512_v25 = vsel %vm511_vm5, %v504_v63, %v508_v17  ;;  %v518_v26 = vsel %vm511_vm5, %v508_v17, %v496_v48 }
  0xd3   : > { %v549_v27 = vmul.f32 %v534_v14, %v513_v21  ;;  %v550_v28 = vmul.f32 %v538_v15, %v519_v24  ;;  %v545_v29 = vmul.f32 %v534_v14, %v512_v25  ;;  %v546_v30 = vmul.f32 %v538_v15, %v518_v26  ;;  %852 = vmatprep.subr.bf16.mxu0 %v552_v18  ;;  %v1816_v15 = vld [vmem:[%s2917_s1 + $0x6] ss:$8 sm:$0xf] }
  0xd4   : > { %853 = vmatpush1.bf16.msra.mxu0 %v551_v19  ;;  %v654_v16 = vrot.slane %v1816_v15, %v2121_v22  ;;  %v658_v24 = vrot.slane %v1816_v15, %v2095_v11 }
  0xd5   : > { %v562_v31 = vpop.permute.xlu1 %561  ;;  %v560_v32 = vpop.permute.xlu0 %559  ;;  %v554_v33 = vpack.c.bf16 %v550_v28, %v546_v30  ;;  %v553_v34 = vpack.c.bf16 %v549_v27, %v545_v29 }
  0xd7   : > { %905 = vmatprep.subr.bf16.mxu1 %v554_v33  ;;  %v662_v33 = vrot.slane %v1816_v15, %v2111_v20 }
  0xd8   : > { %906 = vmatpush1.bf16.msra.mxu1 %v553_v34  ;;  %v666_v34 = vrot.slane %v1816_v15, %v2123_v23 }
  0xd9   : > { %v566_v37 = vpop.permute.xlu1 %565  ;;  %v564_v38 = vpop.permute.xlu0 %563 }
  0xda   : > { %v581_v39 = vsel %vm575_vm6, %v562_v31, %v566_v37  ;;  %v580_v40 = vsel %vm575_vm6, %v560_v32, %v564_v38 }
  0xdb   : > { %v611_v42 = vmul.f32 %v590_v36, %v581_v39  ;;  %v607_v43 = vmul.f32 %v590_v36, %v580_v40 }
  0xdd   : > { %v570_v44 = vpop.permute.xlu1 %569  ;;  %v568_v45 = vpop.permute.xlu0 %567  ;;  %v615_v56 = vpack.c.bf16 %v611_v42, %v607_v43 }
  0xde   : > { %v579_v46 = vsel %vm575_vm6, %v566_v37, %v570_v44  ;;  %v578_v47 = vsel %vm575_vm6, %v564_v38, %v568_v45 }
  0xdf   : > { %v612_v48 = vmul.f32 %v594_v41, %v579_v46  ;;  %v608_v49 = vmul.f32 %v594_v41, %v578_v47 }
  0xe1   : > { %v574_v52 = vpop.permute.xlu1 %573  ;;  %v572_v53 = vpop.permute.xlu0 %571  ;;  %v616_v54 = vpack.c.bf16 %v612_v48, %v608_v49 }
  0xe2   : > { %v577_v57 = vsel %vm575_vm6, %v570_v44, %v574_v52  ;;  %v583_v58 = vsel %vm575_vm6, %v574_v52, %v562_v31  ;;  %v576_v59 = vsel %vm575_vm6, %v568_v45, %v572_v53  ;;  %v582_v60 = vsel %vm575_vm6, %v572_v53, %v560_v32 }
  0xe3   : > { %v613_v61 = vmul.f32 %v598_v50, %v577_v57  ;;  %v614_v62 = vmul.f32 %v602_v51, %v583_v58  ;;  %v609_v63 = vmul.f32 %v598_v50, %v576_v59  ;;  %v610_v8 = vmul.f32 %v602_v51, %v582_v60  ;;  %854 = vmatprep.subr.bf16.mxu0 %v616_v54  ;;  %v1817_v51 = vld [vmem:[%s2917_s1 + $0x7] ss:$8 sm:$0xf] }
  0xe4   : > { %855 = vmatpush1.bf16.msra.mxu0 %v615_v56  ;;  %v718_v52 = vrot.slane %v1817_v51, %v2121_v22  ;;  %v722_v58 = vrot.slane %v1817_v51, %v2095_v11 }
  0xe5   : > { %v626_v9 = vpop.permute.xlu1 %625  ;;  %v624_v12 = vpop.permute.xlu0 %623  ;;  %v618_v13 = vpack.c.bf16 %v614_v62, %v610_v8  ;;  %v617_v14 = vpack.c.bf16 %v613_v61, %v609_v63 }
  0xe7   : > { %907 = vmatprep.subr.bf16.mxu1 %v618_v13  ;;  %v726_v13 = vrot.slane %v1817_v51, %v2111_v20 }
  0xe8   : > { %908 = vmatpush1.bf16.msra.mxu1 %v617_v14  ;;  %v730_v14 = vrot.slane %v1817_v51, %v2123_v23 }
  0xe9   : > { %v630_v17 = vpop.permute.xlu1 %629  ;;  %v628_v18 = vpop.permute.xlu0 %627 }
  0xea   : > { %v645_v19 = vsel %vm639_vm7, %v626_v9, %v630_v17  ;;  %v644_v21 = vsel %vm639_vm7, %v624_v12, %v628_v18 }
  0xeb   : > { %v675_v25 = vmul.f32 %v654_v16, %v645_v19  ;;  %v671_v26 = vmul.f32 %v654_v16, %v644_v21  ;;  %v752_v19 = vpack.c.bf16 %v1969_v2, %v1961_v0  ;;  %v751_v0 = vpack.c.bf16 %v1971_v3, %v1963_v1  ;;  %v1874_v1 = vld [vmem:[%s2918_s2 + $0x14] ss:$8 sps:$4 sm:$0xff]   ;;  %v1876_v3 = vld [vmem:[%s2918_s2 + $0x10] ss:$8 sps:$4 sm:$0xff]  }
  0xed   : > { %v634_v27 = vpop.permute.xlu1 %633  ;;  %v632_v28 = vpop.permute.xlu0 %631  ;;  %v679_v38 = vpack.c.bf16 %v675_v25, %v671_v26 }
  0xee   : > { %v643_v29 = vsel %vm639_vm7, %v630_v17, %v634_v27  ;;  %v642_v30 = vsel %vm639_vm7, %v628_v18, %v632_v28 }
  0xef   : > { %v676_v31 = vmul.f32 %v658_v24, %v643_v29  ;;  %v672_v32 = vmul.f32 %v658_v24, %v642_v30 }
  0xf1   : > { %v638_v35 = vpop.permute.xlu1 %637  ;;  %v636_v36 = vpop.permute.xlu0 %635  ;;  %v680_v37 = vpack.c.bf16 %v676_v31, %v672_v32  ;;  %v754_v32 = vpack.c.bf16 %v1985_v6, %v1987_v7 }
  0xf2   : > { %v641_v39 = vsel %vm639_vm7, %v634_v27, %v638_v35  ;;  %v647_v40 = vsel %vm639_vm7, %v638_v35, %v626_v9  ;;  %v640_v41 = vsel %vm639_vm7, %v632_v28, %v636_v36  ;;  %v646_v42 = vsel %vm639_vm7, %v636_v36, %v624_v12 }
  0xf3   : > { %v677_v43 = vmul.f32 %v662_v33, %v641_v39  ;;  %v678_v44 = vmul.f32 %v666_v34, %v647_v40  ;;  %v673_v45 = vmul.f32 %v662_v33, %v640_v41  ;;  %v674_v46 = vmul.f32 %v666_v34, %v646_v42  ;;  %856 = vmatprep.subr.bf16.mxu0 %v680_v37  ;;  %v1871_v33 = vld [vmem:[%s2918_s2] ss:$8 sps:$4 sm:$0xff]  }
  0xf4   : > { %857 = vmatpush1.bf16.msra.mxu0 %v679_v38  ;;  %v753_v34 = vpack.c.bf16 %v1977_v4, %v1979_v5 }
  0xf5   : > { %v690_v47 = vpop.permute.xlu1 %689  ;;  %v688_v48 = vpop.permute.xlu0 %687  ;;  %v682_v49 = vpack.c.bf16 %v678_v44, %v674_v46  ;;  %v681_v50 = vpack.c.bf16 %v677_v43, %v673_v45 }
  0xf7   : > { %909 = vmatprep.subr.bf16.mxu1 %v682_v49 }
  0xf8   : > { %910 = vmatpush1.bf16.msra.mxu1 %v681_v50 }
  0xf9   : > { %v694_v53 = vpop.permute.xlu1 %693  ;;  %v692_v54 = vpop.permute.xlu0 %691 }
  0xfa   : > { %v709_v56 = vsel %vm703_vm8, %v690_v47, %v694_v53  ;;  %v708_v57 = vsel %vm703_vm8, %v688_v48, %v692_v54 }
  0xfb   : > { %v739_v59 = vmul.f32 %v718_v52, %v709_v56  ;;  %v735_v60 = vmul.f32 %v718_v52, %v708_v57 }
  0xfd   : > { %v698_v61 = vpop.permute.xlu1 %697  ;;  %v696_v62 = vpop.permute.xlu0 %695  ;;  %v743_v18 = vpack.c.bf16 %v739_v59, %v735_v60 }
  0xfe   : > { %v707_v63 = vsel %vm703_vm8, %v694_v53, %v698_v61  ;;  %v706_v8 = vsel %vm703_vm8, %v692_v54, %v696_v62 }
  0xff   : > { %v740_v9 = vmul.f32 %v722_v58, %v707_v63  ;;  %v736_v12 = vmul.f32 %v722_v58, %v706_v8 }
 0x101   : > { %v702_v15 = vpop.permute.xlu1 %701  ;;  %v700_v16 = vpop.permute.xlu0 %699  ;;  %v744_v17 = vpack.c.bf16 %v740_v9, %v736_v12 }
 0x102   : > { %v705_v21 = vsel %vm703_vm8, %v698_v61, %v702_v15  ;;  %v711_v24 = vsel %vm703_vm8, %v702_v15, %v690_v47  ;;  %v704_v25 = vsel %vm703_vm8, %v696_v62, %v700_v16  ;;  %v710_v26 = vsel %vm703_vm8, %v700_v16, %v688_v48 }
 0x103   : > { %v741_v27 = vmul.f32 %v726_v13, %v705_v21  ;;  %v742_v28 = vmul.f32 %v730_v14, %v711_v24  ;;  %v737_v29 = vmul.f32 %v726_v13, %v704_v25  ;;  %v738_v30 = vmul.f32 %v730_v14, %v710_v26  ;;  %858 = vmatprep.subr.bf16.mxu0 %v744_v17  ;;  %v2525_v25 = vld [vmem:[%s2920_s4] sm:$0xff] }
 0x104   : > { %859 = vmatpush1.bf16.msra.mxu0 %v743_v18  ;;  %v1879_v18 = vld [vmem:[%s2919_s3 + $0x4] ss:$8 sps:$4 sm:$0xff]   ;;  %2936 = vst [vmem:[#allocation12_spill] sm:$0xff] %v2525_v25  ;;  %v1913_v26 = vmov 1  }
 0x105   : > { %860 = vmatprep.subr.bf16.mxu0 %v752_v19  ;;  %v746_v2 = vpack.c.bf16 %v742_v28, %v738_v30  ;;  %v745_v31 = vpack.c.bf16 %v741_v27, %v737_v29  ;;  %1866 = vset.pattern.permute.xlu1 %v1913_v26  ;;  %v2530_v27 = vld [vmem:[%s2920_s4 + $0x8] sm:$0xff] }
 0x106   : > { %1867 = vset.pattern.permute.xlu0 %v1913_v26  ;;  %2937 = vst [vmem:[#allocation13_spill] sm:$0xff] %v2530_v27 }
 0x107   : > { %911 = vmatprep.subr.bf16.mxu1 %v746_v2 }
 0x108   : > { %861 = vmatpush1.bf16.msra.mxu0 %v751_v0  ;;  %912 = vmatpush1.bf16.msra.mxu1 %v745_v31 }
 0x109   : > { %913 = vmatprep.subr.bf16.mxu1 %v754_v32 }
 0x10b   : > { %877 = vmatmul.mubr.bf16.vlgmr.msra.gmra.mrb[0].mxu0 %v1871_v33 }
 0x10c   : > { %914 = vmatpush1.bf16.msra.mxu1 %v753_v34  ;;  %1823 = vmatprep.mubr.msk.bf16.mxu0 %vm837_vm1, %v1874_v1 }
 0x10f   : > { %930 = vmatmul.mubr.bf16.vlgmr.msra.gmra.mrb[0].mxu1 %v1871_v33 }
 0x110   : > { %1825 = vmatprep.mubr.msk.bf16.mxu1 %vm837_vm1, %v1874_v1 }
 0x112   : > { %v812_v38 = vpop.permute.xlu0 %811 }
 0x113   : > { %887 = vmatmul.mubr.bf16.gmra.mrb[4].mxu0 %v1876_v3  ;;  %v817_v41 = vpop.permute.xlu1 %816 }
 0x114   : > { %1835 = vmatprep.mubr.msk.bf16.mxu0 %vm837_vm1, %v1879_v18 }
 0x117   : > { %940 = vmatmul.mubr.bf16.gmra.mrb[4].mxu1 %v1876_v3 }
 0x118   : > { %1836 = vmatprep.mubr.msk.bf16.mxu1 %vm837_vm1, %v1879_v18 }
 0x1de   : > { %v2339_v6 = vpop.f32.mrb[0].mxu0 }
 0x1df   : > { %2927 = vst [vmem:[#allocation3_spill] sm:$0xff] %v2339_v6  ;;  %v2341_v4 = vpop.f32.mrb[1].mxu0 }
 0x1e0   : > { %2928 = vst [vmem:[#allocation4_spill] sm:$0xff] %v2341_v4  ;;  %v2343_v5 = vpop.f32.mrb[2].mxu0 }
 0x1e1   : > { %2929 = vst [vmem:[#allocation5_spill] sm:$0xff] %v2343_v5  ;;  %v2345_v7 = vpop.f32.mrb[3].mxu0 }
 0x1e2   : > { %2930 = vst [vmem:[#allocation6_spill] sm:$0xff] %v2345_v7  ;;  %v2347_v35 = vpop.f32.mrb[0].mxu1 }
 0x1e3   : > { %2931 = vst [vmem:[#allocation7_spill] sm:$0xff] %v2347_v35  ;;  %v2349_v36 = vpop.f32.mrb[1].mxu1 }
 0x1e4   : > { %2932 = vst [vmem:[#allocation8_spill] sm:$0xff] %v2349_v36  ;;  %v2351_v37 = vpop.f32.mrb[2].mxu1 }
 0x1e5   : > { %2933 = vst [vmem:[#allocation9_spill] sm:$0xff] %v2351_v37  ;;  %v2353_v39 = vpop.f32.mrb[3].mxu1 }
 0x1e6   : > { %2934 = vst [vmem:[#allocation10_spill] sm:$0xff] %v2353_v39  ;;  %v888_v40 = vpop.f32.mrb[4].mxu0 }
 0x1e7   : > { %v889_v42 = vadd.f32 %v888_v40, %v812_v38  ;;  %v890_v43 = vpop.f32.mrb[5].mxu0 }
 0x1e8   : > { %v892_v44 = vpop.f32.mrb[6].mxu0  ;;  %v891_v60 = vadd.f32 %v890_v43, %v812_v38 }
 0x1e9   : > { %v2355_v45 = vmax.f32 %v889_v42, 0.0  ;;  %v893_v46 = vadd.f32 %v892_v44, %v817_v41  ;;  %v894_v47 = vpop.f32.mrb[7].mxu0 }
 0x1ea   : > { %v941_v48 = vpop.f32.mrb[4].mxu1  ;;  %v895_v61 = vadd.f32 %v894_v47, %v817_v41  ;;  %v2429_v62 = vmax.f32 %v891_v60, 0.0 }
 0x1eb   : > { %v2357_v49 = vmax.f32 %v893_v46, 0.0  ;;  %v942_v50 = vadd.f32 %v941_v48, %v812_v38  ;;  %v943_v51 = vpop.f32.mrb[5].mxu1  ;;  %966 = vrot.lane.b32.xlu1 %v2355_v45, %s1904_s24 }
 0x1ec   : > { %v945_v52 = vpop.f32.mrb[6].mxu1  ;;  %v944_v63 = vadd.f32 %v943_v51, %v812_v38  ;;  %v2433_v8 = vmax.f32 %v895_v61, 0.0 }
 0x1ed   : > { %v2361_v53 = vmax.f32 %v942_v50, 0.0  ;;  %v946_v54 = vadd.f32 %v945_v52, %v817_v41  ;;  %v947_v56 = vpop.f32.mrb[7].mxu1  ;;  %968 = vrot.lane.b32.xlu0 %v2357_v49, %s1904_s24 }
 0x1ee   : > { %v948_v9 = vadd.f32 %v947_v56, %v817_v41  ;;  %v2437_v12 = vmax.f32 %v944_v63, 0.0 }
 0x1ef   : > { %2935 = vst [vmem:[#allocation11_spill] sm:$0xff] %v2361_v53  ;;  %v2367_v58 = vmax.f32 %v946_v54, 0.0  ;;  %974 = vrot.lane.b32.xlu1 %v2361_v53, %s1904_s24  ;;  %v990_v54 = vld [vmem:[%s2917_s1] ss:$8 sm:$0xf] }
 0x1f0   : > { %v2441_v13 = vmax.f32 %v948_v9, 0.0  ;;  %v999_v60 = vrot.slane %v990_v54, %v2095_v11  ;;  %v1003_v61 = vrot.slane %v990_v54, %v2111_v20  ;;  %v995_v36 = vrot.slane %v990_v54, %v2121_v22 }
 0x1f1   : > { %976 = vrot.lane.b32.xlu0 %v2367_v58, %s1904_s24  ;;  %v1007_v35 = vrot.slane %v990_v54, %v2123_v23 }
 0x1f3   : > { %1028 = vrot.lane.b32.xlu1 %v2355_v45, %s1905_s25 }
 0x1f5   : > { %1030 = vrot.lane.b32.xlu0 %v2357_v49, %s1905_s25 }
 0x1f7   : > { %1036 = vrot.lane.b32.xlu1 %v2361_v53, %s1905_s25 }
 0x1f9   : > { %1038 = vrot.lane.b32.xlu0 %v2367_v58, %s1905_s25 }
 0x1fb   : > { %1090 = vrot.lane.b32.xlu1 %v2355_v45, %s1906_s26 }
 0x1fd   : > { %1092 = vrot.lane.b32.xlu0 %v2357_v49, %s1906_s26 }
 0x1ff   : > { %1098 = vrot.lane.b32.xlu1 %v2361_v53, %s1906_s26 }
 0x201   : > { %1100 = vrot.lane.b32.xlu0 %v2367_v58, %s1906_s26 }
 0x203   : > { %1152 = vrot.lane.b32.xlu1 %v2355_v45, %s1907_s27 }
 0x205   : > { %1154 = vrot.lane.b32.xlu0 %v2357_v49, %s1907_s27 }
 0x207   : > { %1160 = vrot.lane.b32.xlu1 %v2361_v53, %s1907_s27 }
 0x209   : > { %1162 = vrot.lane.b32.xlu0 %v2367_v58, %s1907_s27 }
 0x20b   : > { %1214 = vrot.lane.b32.xlu1 %v2355_v45, %s1908_s28 }
 0x20d   : > { %1216 = vrot.lane.b32.xlu0 %v2357_v49, %s1908_s28 }
 0x20f   : > { %1222 = vrot.lane.b32.xlu1 %v2361_v53, %s1908_s28 }
 0x211   : > { %1224 = vrot.lane.b32.xlu0 %v2367_v58, %s1908_s28 }
 0x213   : > { %1276 = vrot.lane.b32.xlu1 %v2355_v45, %s1909_s29 }
 0x215   : > { %1278 = vrot.lane.b32.xlu0 %v2357_v49, %s1909_s29 }
 0x217   : > { %1284 = vrot.lane.b32.xlu1 %v2361_v53, %s1909_s29 }
 0x219   : > { %1286 = vrot.lane.b32.xlu0 %v2367_v58, %s1909_s29 }
 0x21b   : > { %1338 = vrot.lane.b32.xlu1 %v2355_v45, %s1910_s30 }
 0x21d   : > { %1340 = vrot.lane.b32.xlu0 %v2357_v49, %s1910_s30 }
 0x21f   : > { %1346 = vrot.lane.b32.xlu1 %v2361_v53, %s1910_s30 }
 0x221   : > { %1348 = vrot.lane.b32.xlu0 %v2367_v58, %s1910_s30 }
 0x223   : > { %1400 = vrot.lane.b32.xlu1 %v2355_v45, %s1911_s6 }
 0x225   : > { %1402 = vrot.lane.b32.xlu0 %v2357_v49, %s1911_s6 }
 0x227   : > { %1408 = vrot.lane.b32.xlu1 %v2361_v53, %s1911_s6 }
 0x229   : > { %1410 = vrot.lane.b32.xlu0 %v2367_v58, %s1911_s6 }
 0x22b   : > { %970 = vrot.lane.b32.xlu1 %v2429_v62, %s1904_s24 }
 0x22d   : > { %972 = vrot.lane.b32.xlu0 %v2433_v8, %s1904_s24 }
 0x22f   : > { %978 = vrot.lane.b32.xlu1 %v2437_v12, %s1904_s24 }
 0x231   : > { %980 = vrot.lane.b32.xlu0 %v2441_v13, %s1904_s24 }
 0x233   : > { %1032 = vrot.lane.b32.xlu1 %v2429_v62, %s1905_s25 }
 0x235   : > { %1034 = vrot.lane.b32.xlu0 %v2433_v8, %s1905_s25 }
 0x237   : > { %1040 = vrot.lane.b32.xlu1 %v2437_v12, %s1905_s25 }
 0x239   : > { %1042 = vrot.lane.b32.xlu0 %v2441_v13, %s1905_s25 }
 0x23b   : > { %1094 = vrot.lane.b32.xlu1 %v2429_v62, %s1906_s26 }
 0x23d   : > { %1096 = vrot.lane.b32.xlu0 %v2433_v8, %s1906_s26 }
 0x23f   : > { %1102 = vrot.lane.b32.xlu1 %v2437_v12, %s1906_s26 }
 0x241   : > { %1104 = vrot.lane.b32.xlu0 %v2441_v13, %s1906_s26 }
 0x243   : > { %1156 = vrot.lane.b32.xlu1 %v2429_v62, %s1907_s27 }
 0x245   : > { %1158 = vrot.lane.b32.xlu0 %v2433_v8, %s1907_s27 }
 0x247   : > { %1164 = vrot.lane.b32.xlu1 %v2437_v12, %s1907_s27 }
 0x249   : > { %1166 = vrot.lane.b32.xlu0 %v2441_v13, %s1907_s27 }
 0x24b   : > { %1218 = vrot.lane.b32.xlu1 %v2429_v62, %s1908_s28 }
 0x24d   : > { %1220 = vrot.lane.b32.xlu0 %v2433_v8, %s1908_s28 }
 0x24f   : > { %1226 = vrot.lane.b32.xlu1 %v2437_v12, %s1908_s28 }
 0x251   : > { %1228 = vrot.lane.b32.xlu0 %v2441_v13, %s1908_s28 }
 0x253   : > { %1280 = vrot.lane.b32.xlu1 %v2429_v62, %s1909_s29 }
 0x255   : > { %1282 = vrot.lane.b32.xlu0 %v2433_v8, %s1909_s29 }
 0x257   : > { %1288 = vrot.lane.b32.xlu1 %v2437_v12, %s1909_s29 }
 0x259   : > { %1290 = vrot.lane.b32.xlu0 %v2441_v13, %s1909_s29  ;;  %s2899_s29 = scalar_lea.vmem %s2921_s5, %s1843_s20 }
 0x25b   : > { %1342 = vrot.lane.b32.xlu1 %v2429_v62, %s1910_s30 }
 0x25d   : > { %1344 = vrot.lane.b32.xlu0 %v2433_v8, %s1910_s30  ;;  %v2491_v14 = vpop.permute.xlu1 %966 }
 0x25f   : > { %v2493_v15 = vpop.permute.xlu0 %968  ;;  %1350 = vrot.lane.b32.xlu1 %v2437_v12, %s1910_s30 }
 0x261   : > { %1352 = vrot.lane.b32.xlu0 %v2441_v13, %s1910_s30  ;;  %v2499_v16 = vpop.permute.xlu1 %974 }
 0x263   : > { %v2501_v17 = vpop.permute.xlu0 %976  ;;  %1404 = vrot.lane.b32.xlu1 %v2429_v62, %s1911_s6 }
 0x265   : > { %1406 = vrot.lane.b32.xlu0 %v2433_v8, %s1911_s6  ;;  %v2510_v19 = vpop.permute.xlu1 %1028 }
 0x267   : > { %v2514_v21 = vpop.permute.xlu0 %1030  ;;  %1412 = vrot.lane.b32.xlu1 %v2437_v12, %s1911_s6 }
 0x269   : > { %1414 = vrot.lane.b32.xlu0 %v2441_v13, %s1911_s6  ;;  %v2520_v24 = vpop.permute.xlu1 %1036 }
 0x26b   : > { %v2532_v28 = vpop.permute.xlu0 %1038  ;;  %1509 = vperm.xlu1 %1866, %v2525_v25  }
 0x26d   : > { %v2535_v29 = vpop.permute.xlu1 %1090  ;;  %1513 = vperm.xlu0 %1867, %v2530_v27  }
 0x26f   : > { %v2538_v30 = vpop.permute.xlu0 %1092  ;;  %1868 = vset.pattern.permute.xlu1 %v1912_v55 }
 0x271   : > { %v2541_v0 = vpop.permute.xlu1 %1098 }
 0x273   : > { %v2543_v2 = vpop.permute.xlu0 %1100 }
 0x275   : > { %v2545_v31 = vpop.permute.xlu1 %1152 }
 0x277   : > { %v2547_v32 = vpop.permute.xlu0 %1154 }
 0x279   : > { %v2549_v33 = vpop.permute.xlu1 %1160 }
 0x27b   : > { %v2551_v34 = vpop.permute.xlu0 %1162 }
 0x27d   : > { %v2553_v1 = vpop.permute.xlu1 %1214 }
 0x27f   : > { %v2555_v3 = vpop.permute.xlu0 %1216 }
 0x281   : > { %v2557_v38 = vpop.permute.xlu1 %1222 }
 0x283   : > { %v2559_v40 = vpop.permute.xlu0 %1224 }
 0x285   : > { %v2561_v55 = vpop.permute.xlu1 %1276 }
 0x287   : > { %v2563_v41 = vpop.permute.xlu0 %1278 }
 0x289   : > { %v2565_v42 = vpop.permute.xlu1 %1284 }
 0x28b   : > { %v2567_v43 = vpop.permute.xlu0 %1286 }
 0x28d   : > { %v2569_v44 = vpop.permute.xlu1 %1338 }
 0x28f   : > { %v2571_v46 = vpop.permute.xlu0 %1340 }
 0x291   : > { %v2573_v47 = vpop.permute.xlu1 %1346 }
 0x293   : > { %v2575_v48 = vpop.permute.xlu0 %1348 }
 0x295   : > { %v2577_v50 = vpop.permute.xlu1 %1400 }
 0x297   : > { %v2579_v51 = vpop.permute.xlu0 %1402 }
 0x299   : > { %v2581_v52 = vpop.permute.xlu1 %1408 }
 0x29b   : > { %v2586_v56 = vpop.permute.xlu0 %1410 }
 0x29d   : > { %v971_v63 = vpop.permute.xlu1 %970 }
 0x29e   : > { %v984_v9 = vsel %vm256_vm0, %v971_v63, %v2499_v16  ;;  %v986_v18 = vsel %vm256_vm0, %v2491_v14, %v971_v63  ;;  %v1826_v63 = vld [vmem:[%s2917_s1 + $0x1] ss:$8 sm:$0xf] }
 0x29f   : > { %v973_v26 = vpop.permute.xlu0 %972  ;;  %v1013_v39 = vmul.f32 %v999_v60, %v986_v18  ;;  %v1014_v37 = vmul.f32 %v1003_v61, %v984_v9 }
 0x2a0   : > { %v985_v59 = vsel %vm256_vm0, %v973_v26, %v2501_v17  ;;  %v987_v57 = vsel %vm256_vm0, %v2493_v15, %v973_v26 }
 0x2a1   : > { %v1017_v7 = vmul.f32 %v999_v60, %v987_v57  ;;  %v1018_v5 = vmul.f32 %v1003_v61, %v985_v59  ;;  %v979_v4 = vpop.permute.xlu1 %978  ;;  %v1061_v60 = vrot.slane %v1826_v63, %v2095_v11  ;;  %v1065_v61 = vrot.slane %v1826_v63, %v2111_v20 }
 0x2a2   : > { %v982_v6 = vsel %vm256_vm0, %v2499_v16, %v979_v4  ;;  %v988_v26 = vsel %vm256_vm0, %v979_v4, %v2491_v14 }
 0x2a3   : > { %v1022_v27 = vpack.c.bf16 %v1018_v5, %v1014_v37  ;;  %v981_v25 = vpop.permute.xlu0 %980  ;;  %v1021_v54 = vpack.c.bf16 %v1017_v7, %v1013_v39  ;;  %v1012_v16 = vmul.f32 %v995_v36, %v988_v26  ;;  %v1015_v9 = vmul.f32 %v1007_v35, %v982_v6 }
 0x2a4   : > { %v983_v57 = vsel %vm256_vm0, %v2501_v17, %v981_v25  ;;  %v989_v59 = vsel %vm256_vm0, %v981_v25, %v2493_v15  ;;  %v1057_v15 = vrot.slane %v1826_v63, %v2121_v22 }
 0x2a5   : > { %v1016_v18 = vmul.f32 %v995_v36, %v989_v59  ;;  %v1019_v53 = vmul.f32 %v1007_v35, %v983_v57  ;;  %1528 = vmatprep.subr.bf16.mxu0 %v1021_v54  ;;  %v1033_v4 = vpop.permute.xlu1 %1032  ;;  %v1069_v36 = vrot.slane %v1826_v63, %v2123_v23 }
 0x2a6   : > { %v1046_v5 = vsel %vm319_vm2, %v1033_v4, %v2520_v24  ;;  %v1048_v7 = vsel %vm319_vm2, %v2510_v19, %v1033_v4 }
 0x2a7   : > { %v1020_v37 = vpack.c.bf16 %v1016_v18, %v1012_v16  ;;  %v1035_v39 = vpop.permute.xlu0 %1034  ;;  %v1023_v14 = vpack.c.bf16 %v1019_v53, %v1015_v9  ;;  %v1075_v17 = vmul.f32 %v1061_v60, %v1048_v7  ;;  %v1076_v25 = vmul.f32 %v1065_v61, %v1046_v5  ;;  %v1827_v53 = vld [vmem:[%s2917_s1 + $0x2] ss:$8 sm:$0xf] }
 0x2a8   : > { %v1047_v6 = vsel %vm319_vm2, %v1035_v39, %v2532_v28  ;;  %v1049_v35 = vsel %vm319_vm2, %v2514_v21, %v1035_v39  ;;  %v1123_v4 = vrot.slane %v1827_v53, %v2095_v11 }
 0x2a9   : > { %v1079_v26 = vmul.f32 %v1061_v60, %v1049_v35  ;;  %v1080_v54 = vmul.f32 %v1065_v61, %v1047_v6  ;;  %1529 = vmatpush1.bf16.msra.mxu0 %v1020_v37  ;;  %1571 = vmatprep.subr.bf16.mxu1 %v1023_v14  ;;  %v1041_v57 = vpop.permute.xlu1 %1040  ;;  %v1119_v6 = vrot.slane %v1827_v53, %v2121_v22 }
 0x2aa   : > { %v1044_v59 = vsel %vm319_vm2, %v2520_v24, %v1041_v57  ;;  %v1050_v16 = vsel %vm319_vm2, %v1041_v57, %v2510_v19  ;;  %1572 = vmatpush1.bf16.msra.mxu1 %v1022_v27  ;;  %v1127_v24 = vrot.slane %v1827_v53, %v2111_v20 }
 0x2ab   : > { %v1084_v63 = vpack.c.bf16 %v1080_v54, %v1076_v25  ;;  %v1043_v9 = vpop.permute.xlu0 %1042  ;;  %v1083_v60 = vpack.c.bf16 %v1079_v26, %v1075_v17  ;;  %v1074_v5 = vmul.f32 %v1057_v15, %v1050_v16  ;;  %v1077_v7 = vmul.f32 %v1069_v36, %v1044_v59  ;;  %v1828_v16 = vld [vmem:[%s2917_s1 + $0x3] ss:$8 sm:$0xf] }
 0x2ac   : > { %v1045_v61 = vsel %vm319_vm2, %v2532_v28, %v1043_v9  ;;  %v1051_v18 = vsel %vm319_vm2, %v1043_v9, %v2514_v21  ;;  %v1131_v25 = vrot.slane %v1827_v53, %v2123_v23 }
 0x2ad   : > { %v1078_v37 = vmul.f32 %v1057_v15, %v1051_v18  ;;  %v1081_v19 = vmul.f32 %v1069_v36, %v1045_v61  ;;  %1530 = vmatprep.subr.bf16.mxu0 %v1083_v60  ;;  %v1095_v27 = vpop.permute.xlu1 %1094 }
 0x2ae   : > { %v1108_v39 = vsel %vm383_vm3, %v1095_v27, %v2541_v0  ;;  %v1110_v28 = vsel %vm383_vm3, %v2535_v29, %v1095_v27 }
 0x2af   : > { %v1082_v14 = vpack.c.bf16 %v1078_v37, %v1074_v5  ;;  %v1097_v21 = vpop.permute.xlu0 %1096  ;;  %v1085_v17 = vpack.c.bf16 %v1081_v19, %v1077_v7  ;;  %v1137_v35 = vmul.f32 %v1123_v4, %v1110_v28  ;;  %v1138_v26 = vmul.f32 %v1127_v24, %v1108_v39 }
 0x2b0   : > { %v1109_v15 = vsel %vm383_vm3, %v1097_v21, %v2543_v2  ;;  %v1111_v36 = vsel %vm383_vm3, %v2538_v30, %v1097_v21  ;;  %v1185_v5 = vrot.slane %v1828_v16, %v2095_v11 }
 0x2b1   : > { %v1141_v54 = vmul.f32 %v1123_v4, %v1111_v36  ;;  %v1142_v57 = vmul.f32 %v1127_v24, %v1109_v15  ;;  %1531 = vmatpush1.bf16.msra.mxu0 %v1082_v14  ;;  %1573 = vmatprep.subr.bf16.mxu1 %v1085_v17  ;;  %v1103_v59 = vpop.permute.xlu1 %1102  ;;  %v1181_v14 = vrot.slane %v1828_v16, %v2121_v22 }
 0x2b2   : > { %v1106_v9 = vsel %vm383_vm3, %v2541_v0, %v1103_v59  ;;  %v1112_v60 = vsel %vm383_vm3, %v1103_v59, %v2535_v29  ;;  %1574 = vmatpush1.bf16.msra.mxu1 %v1084_v63  ;;  %v1189_v0 = vrot.slane %v1828_v16, %v2111_v20 }
 0x2b3   : > { %v1146_v53 = vpack.c.bf16 %v1142_v57, %v1138_v26  ;;  %v1105_v61 = vpop.permute.xlu0 %1104  ;;  %v1145_v18 = vpack.c.bf16 %v1141_v54, %v1137_v35  ;;  %v1136_v7 = vmul.f32 %v1119_v6, %v1112_v60  ;;  %v1139_v37 = vmul.f32 %v1131_v25, %v1106_v9  ;;  %v1829_v54 = vld [vmem:[%s2917_s1 + $0x4] ss:$8 sm:$0xf] }
 0x2b4   : > { %v1107_v4 = vsel %vm383_vm3, %v2543_v2, %v1105_v61  ;;  %v1113_v24 = vsel %vm383_vm3, %v1105_v61, %v2538_v30  ;;  %v1193_v35 = vrot.slane %v1828_v16, %v2123_v23 }
 0x2b5   : > { %v1140_v19 = vmul.f32 %v1119_v6, %v1113_v24  ;;  %v1143_v29 = vmul.f32 %v1131_v25, %v1107_v4  ;;  %1532 = vmatprep.subr.bf16.mxu0 %v1145_v18  ;;  %v1157_v63 = vpop.permute.xlu1 %1156  ;;  %v1243_v4 = vrot.slane %v1829_v54, %v2121_v22 }
 0x2b6   : > { %v1170_v27 = vsel %vm447_vm4, %v1157_v63, %v2549_v33  ;;  %v1172_v2 = vsel %vm447_vm4, %v2545_v31, %v1157_v63 }
 0x2b7   : > { %v1144_v39 = vpack.c.bf16 %v1140_v19, %v1136_v7  ;;  %v1159_v30 = vpop.permute.xlu0 %1158  ;;  %v1147_v28 = vpack.c.bf16 %v1143_v29, %v1139_v37  ;;  %v1199_v21 = vmul.f32 %v1185_v5, %v1172_v2  ;;  %v1200_v15 = vmul.f32 %v1189_v0, %v1170_v27 }
 0x2b8   : > { %v1171_v17 = vsel %vm447_vm4, %v1159_v30, %v2551_v34  ;;  %v1173_v6 = vsel %vm447_vm4, %v2547_v32, %v1159_v30  ;;  %v1251_v29 = vrot.slane %v1829_v54, %v2111_v20 }
 0x2b9   : > { %v1203_v36 = vmul.f32 %v1185_v5, %v1173_v6  ;;  %v1204_v25 = vmul.f32 %v1189_v0, %v1171_v17  ;;  %1533 = vmatpush1.bf16.msra.mxu0 %v1144_v39  ;;  %1575 = vmatprep.subr.bf16.mxu1 %v1147_v28  ;;  %v1165_v26 = vpop.permute.xlu1 %1164  ;;  %v1255_v39 = vrot.slane %v1829_v54, %v2123_v23  ;;  %v1830_v17 = vld [vmem:[%s2917_s1 + $0x5] ss:$8 sm:$0xf] }
 0x2ba   : > { %v1168_v57 = vsel %vm447_vm4, %v2549_v33, %v1165_v26  ;;  %v1174_v59 = vsel %vm447_vm4, %v1165_v26, %v2545_v31  ;;  %1576 = vmatpush1.bf16.msra.mxu1 %v1146_v53  ;;  %v1247_v33 = vrot.slane %v1829_v54, %v2095_v11 }
 0x2bb   : > { %v1208_v16 = vpack.c.bf16 %v1204_v25, %v1200_v15  ;;  %v1167_v9 = vpop.permute.xlu0 %1166  ;;  %v1207_v60 = vpack.c.bf16 %v1203_v36, %v1199_v21  ;;  %v1198_v24 = vmul.f32 %v1181_v14, %v1174_v59  ;;  %v1201_v5 = vmul.f32 %v1193_v35, %v1168_v57 }
 0x2bc   : > { %v1169_v61 = vsel %vm447_vm4, %v2551_v34, %v1167_v9  ;;  %v1175_v18 = vsel %vm447_vm4, %v1167_v9, %v2547_v32  ;;  %v1305_v57 = vrot.slane %v1830_v17, %v2121_v22 }
 0x2bd   : > { %v1202_v0 = vmul.f32 %v1181_v14, %v1175_v18  ;;  %v1205_v31 = vmul.f32 %v1193_v35, %v1169_v61  ;;  %1534 = vmatprep.subr.bf16.mxu0 %v1207_v60  ;;  %v1219_v53 = vpop.permute.xlu1 %1218 }
 0x2be   : > { %v1232_v7 = vsel %vm511_vm5, %v1219_v53, %v2557_v38  ;;  %v1234_v34 = vsel %vm511_vm5, %v2553_v1, %v1219_v53 }
 0x2bf   : > { %v1206_v37 = vpack.c.bf16 %v1202_v0, %v1198_v24  ;;  %v1221_v32 = vpop.permute.xlu0 %1220  ;;  %v1209_v19 = vpack.c.bf16 %v1205_v31, %v1201_v5  ;;  %v1260_v63 = vmul.f32 %v1243_v4, %v1234_v34  ;;  %v1261_v30 = vmul.f32 %v1247_v33, %v1232_v7 }
 0x2c0   : > { %v1233_v27 = vsel %vm511_vm5, %v1221_v32, %v2559_v40  ;;  %v1235_v2 = vsel %vm511_vm5, %v2555_v3, %v1221_v32  ;;  %v1313_v5 = vrot.slane %v1830_v17, %v2111_v20  ;;  %v1317_v0 = vrot.slane %v1830_v17, %v2123_v23  ;;  %v1831_v32 = vld [vmem:[%s2917_s1 + $0x6] ss:$8 sm:$0xf] }
 0x2c1   : > { %v1264_v28 = vmul.f32 %v1243_v4, %v1235_v2  ;;  %v1265_v14 = vmul.f32 %v1247_v33, %v1233_v27  ;;  %1535 = vmatpush1.bf16.msra.mxu0 %v1206_v37  ;;  %1577 = vmatprep.subr.bf16.mxu1 %v1209_v19  ;;  %v1227_v21 = vpop.permute.xlu1 %1226 }
 0x2c2   : > { %v1230_v6 = vsel %vm511_vm5, %v2557_v38, %v1227_v21  ;;  %v1236_v35 = vsel %vm511_vm5, %v1227_v21, %v2553_v1  ;;  %1578 = vmatpush1.bf16.msra.mxu1 %v1208_v16  ;;  %v1309_v38 = vrot.slane %v1830_v17, %v2095_v11 }
 0x2c3   : > { %v1268_v15 = vpack.c.bf16 %v1264_v28, %v1260_v63  ;;  %v1229_v36 = vpop.permute.xlu0 %1228  ;;  %v1269_v25 = vpack.c.bf16 %v1265_v14, %v1261_v30  ;;  %v1262_v59 = vmul.f32 %v1251_v29, %v1230_v6  ;;  %v1263_v9 = vmul.f32 %v1255_v39, %v1236_v35 }
 0x2c4   : > { %v1231_v26 = vsel %vm511_vm5, %v2559_v40, %v1229_v36  ;;  %v1237_v54 = vsel %vm511_vm5, %v1229_v36, %v2555_v3  ;;  %v1367_v28 = vrot.slane %v1831_v32, %v2121_v22 }
 0x2c5   : > { %v1266_v60 = vmul.f32 %v1251_v29, %v1231_v26  ;;  %v1267_v1 = vmul.f32 %v1255_v39, %v1237_v54  ;;  %1536 = vmatprep.subr.bf16.mxu0 %v1269_v25  ;;  %v1281_v16 = vpop.permute.xlu1 %1280  ;;  %v1375_v54 = vrot.slane %v1831_v32, %v2111_v20 }
 0x2c6   : > { %v1294_v61 = vsel %vm575_vm6, %v1281_v16, %v2565_v42  ;;  %v1296_v40 = vsel %vm575_vm6, %v2561_v55, %v1281_v16  ;;  %1537 = vmatpush1.bf16.msra.mxu0 %v1268_v15  ;;  %v1832_v16 = vld [vmem:[%s2917_s1 + $0x7] ss:$8 sm:$0xf] }
 0x2c7   : > { %v1270_v3 = vpack.c.bf16 %v1266_v60, %v1262_v59  ;;  %v1283_v18 = vpop.permute.xlu0 %1282  ;;  %v1271_v4 = vpack.c.bf16 %v1267_v1, %v1263_v9  ;;  %v1322_v31 = vmul.f32 %v1305_v57, %v1296_v40  ;;  %v1323_v53 = vmul.f32 %v1309_v38, %v1294_v61 }
 0x2c8   : > { %v1295_v33 = vsel %vm575_vm6, %v1283_v18, %v2567_v43  ;;  %v1297_v24 = vsel %vm575_vm6, %v2563_v41, %v1283_v18 }
 0x2c9   : > { %v1326_v7 = vmul.f32 %v1305_v57, %v1297_v24  ;;  %v1327_v34 = vmul.f32 %v1309_v38, %v1295_v33  ;;  %1579 = vmatprep.subr.bf16.mxu1 %v1271_v4  ;;  %v1289_v37 = vpop.permute.xlu1 %1288  ;;  %v1379_v57 = vrot.slane %v1831_v32, %v2123_v23 }
 0x2ca   : > { %v1292_v19 = vsel %vm575_vm6, %v2565_v42, %v1289_v37  ;;  %v1298_v29 = vsel %vm575_vm6, %v1289_v37, %v2561_v55  ;;  %1580 = vmatpush1.bf16.msra.mxu1 %v1270_v3  ;;  %v1371_v42 = vrot.slane %v1831_v32, %v2095_v11 }
 0x2cb   : > { %v1330_v63 = vpack.c.bf16 %v1326_v7, %v1322_v31  ;;  %v1291_v27 = vpop.permute.xlu0 %1290  ;;  %v1331_v2 = vpack.c.bf16 %v1327_v34, %v1323_v53  ;;  %v1324_v14 = vmul.f32 %v1313_v5, %v1292_v19  ;;  %v1325_v21 = vmul.f32 %v1317_v0, %v1298_v29 }
 0x2cc   : > { %v1293_v39 = vsel %vm575_vm6, %v2567_v43, %v1291_v27  ;;  %v1299_v30 = vsel %vm575_vm6, %v1291_v27, %v2563_v41  ;;  %v1437_v19 = vrot.slane %v1832_v16, %v2111_v20  ;;  %v1441_v29 = vrot.slane %v1832_v16, %v2123_v23 }
 0x2cd   : > { %v1328_v17 = vmul.f32 %v1313_v5, %v1293_v39  ;;  %v1329_v55 = vmul.f32 %v1317_v0, %v1299_v30  ;;  %1538 = vmatprep.subr.bf16.mxu0 %v1331_v2  ;;  %v1343_v6 = vpop.permute.xlu1 %1342  ;;  %v1429_v5 = vrot.slane %v1832_v16, %v2121_v22 }
 0x2ce   : > { %v1356_v35 = vsel %vm639_vm7, %v1343_v6, %v2573_v47  ;;  %v1358_v43 = vsel %vm639_vm7, %v2569_v44, %v1343_v6  ;;  %1539 = vmatpush1.bf16.msra.mxu0 %v1330_v63 }
 0x2cf   : > { %v1332_v41 = vpack.c.bf16 %v1328_v17, %v1324_v14  ;;  %v1345_v15 = vpop.permute.xlu0 %1344  ;;  %v1333_v36 = vpack.c.bf16 %v1329_v55, %v1325_v21  ;;  %v1384_v38 = vmul.f32 %v1367_v28, %v1358_v43  ;;  %v1385_v59 = vmul.f32 %v1371_v42, %v1356_v35 }
 0x2d0   : > { %v1357_v25 = vsel %vm639_vm7, %v1345_v15, %v2575_v48  ;;  %v1359_v26 = vsel %vm639_vm7, %v2571_v46, %v1345_v15  ;;  %v1463_v55 = vpack.c.bf16 %v2433_v8, %v2429_v62  ;;  %v2938_v62 = vpack.c.bf16 %v2357_v49, %v2355_v45  ;;  %v2939_v8 = vld [vmem:[#allocation11_spill] sm:$0xff] }
 0x2d1   : > { %v1388_v9 = vmul.f32 %v1367_v28, %v1359_v26  ;;  %v1389_v60 = vmul.f32 %v1371_v42, %v1357_v25  ;;  %1581 = vmatprep.subr.bf16.mxu1 %v1333_v36  ;;  %v1351_v1 = vpop.permute.xlu1 %1350 }
 0x2d2   : > { %v1354_v61 = vsel %vm639_vm7, %v2573_v47, %v1351_v1  ;;  %v1360_v40 = vsel %vm639_vm7, %v1351_v1, %v2569_v44  ;;  %1582 = vmatpush1.bf16.msra.mxu1 %v1332_v41  ;;  %v1433_v47 = vrot.slane %v1832_v16, %v2095_v11 }
 0x2d3   : > { %v1392_v3 = vpack.c.bf16 %v1388_v9, %v1384_v38  ;;  %v1353_v18 = vpop.permute.xlu0 %1352  ;;  %v1393_v4 = vpack.c.bf16 %v1389_v60, %v1385_v59  ;;  %v1386_v0 = vmul.f32 %v1375_v54, %v1354_v61  ;;  %v1387_v31 = vmul.f32 %v1379_v57, %v1360_v40 }
 0x2d4   : > { %v1355_v33 = vsel %vm639_vm7, %v2575_v48, %v1353_v18  ;;  %v1361_v24 = vsel %vm639_vm7, %v1353_v18, %v2571_v46 }
 0x2d5   : > { %v1390_v53 = vmul.f32 %v1375_v54, %v1355_v33  ;;  %v1391_v44 = vmul.f32 %v1379_v57, %v1361_v24  ;;  %1540 = vmatprep.subr.bf16.mxu0 %v1393_v4  ;;  %v1405_v7 = vpop.permute.xlu1 %1404 }
 0x2d6   : > { %v1418_v34 = vsel %vm703_vm8, %v1405_v7, %v2581_v52  ;;  %v1420_v48 = vsel %vm703_vm8, %v2577_v50, %v1405_v7  ;;  %1541 = vmatpush1.bf16.msra.mxu0 %v1392_v3 }
 0x2d7   : > { %v1394_v46 = vpack.c.bf16 %v1390_v53, %v1386_v0  ;;  %v1407_v37 = vpop.permute.xlu0 %1406  ;;  %v1395_v22 = vpack.c.bf16 %v1391_v44, %v1387_v31  ;;  %v1446_v63 = vmul.f32 %v1429_v5, %v1420_v48  ;;  %v1447_v27 = vmul.f32 %v1433_v47, %v1418_v34  ;;  %v2942_v44 = vld [vmem:[#allocation13_spill] sm:$0xff] }
 0x2d8   : > { %v1419_v11 = vsel %vm703_vm8, %v1407_v37, %v2586_v56  ;;  %v1421_v32 = vsel %vm703_vm8, %v2579_v51, %v1407_v37 }
 0x2d9   : > { %v1450_v2 = vmul.f32 %v1429_v5, %v1421_v32  ;;  %v1451_v39 = vmul.f32 %v1433_v47, %v1419_v11  ;;  %1583 = vmatprep.subr.bf16.mxu1 %v1395_v22  ;;  %v1413_v30 = vpop.permute.xlu1 %1412  ;;  %v2941_v47 = vld [vmem:[#allocation12_spill] sm:$0xff] }
 0x2da   : > { %v1416_v28 = vsel %vm703_vm8, %v2581_v52, %v1413_v30  ;;  %v1422_v42 = vsel %vm703_vm8, %v1413_v30, %v2577_v50  ;;  %1584 = vmatpush1.bf16.msra.mxu1 %v1394_v46 }
 0x2db   : > { %v1454_v14 = vpack.c.bf16 %v1450_v2, %v1446_v63  ;;  %v1415_v21 = vpop.permute.xlu0 %1414  ;;  %v1455_v20 = vpack.c.bf16 %v1451_v39, %v1447_v27  ;;  %v1448_v52 = vmul.f32 %v1437_v19, %v1416_v28  ;;  %v1449_v6 = vmul.f32 %v1441_v29, %v1422_v42 }
 0x2dc   : > { %v1417_v23 = vsel %vm703_vm8, %v2586_v56, %v1415_v21  ;;  %v1423_v17 = vsel %vm703_vm8, %v1415_v21, %v2579_v51  ;;  %v1465_v56 = vpack.c.bf16 %v2441_v13, %v2437_v12  ;;  %v2940_v51 = vpack.c.bf16 %v2367_v58, %v2939_v8 }
 0x2dd   : > { %v1452_v35 = vmul.f32 %v1437_v19, %v1417_v23  ;;  %v1453_v43 = vmul.f32 %v1441_v29, %v1423_v17  ;;  %1542 = vmatprep.subr.bf16.mxu0 %v1455_v20 }
 0x2de   : > { %1543 = vmatpush1.bf16.msra.mxu0 %v1454_v14 }
 0x2df   : > { %v1456_v50 = vpack.c.bf16 %v1452_v35, %v1448_v52  ;;  %1544 = vmatprep.subr.bf16.mxu0 %v1463_v55  ;;  %v1457_v41 = vpack.c.bf16 %v1453_v43, %v1449_v6  ;;  %v1914_v43 = vmov 3  }
 0x2e0   : > { %1869 = vset.pattern.permute.xlu0 %v1914_v43 }
 0x2e1   : > { %1585 = vmatprep.subr.bf16.mxu1 %v1457_v41 }
 0x2e2   : > { %1545 = vmatpush1.bf16.msra.mxu0 %v2938_v62  ;;  %1586 = vmatpush1.bf16.msra.mxu1 %v1456_v50 }
 0x2e3   : > { %1587 = vmatprep.subr.bf16.mxu1 %v1465_v56 }
 0x2e5   : > { %1561 = vmatmul.mubr.bf16.vlgmr.msra.gmra.mrb[8].mxu0 %v1877_v10 }
 0x2e6   : > { %1588 = vmatpush1.bf16.msra.mxu1 %v2940_v51 }
 0x2e9   : > { %1604 = vmatmul.mubr.bf16.vlgmr.msra.gmra.mrb[8].mxu1 %v1877_v10 }
 0x2ea   : > { %v1510_v15 = vpop.permute.xlu1 %1509 }
 0x2ec   : > { %v1514_v25 = vpop.permute.xlu0 %1513 }
 0x3b8   : > { %v1562_v36 = vpop.f32.mrb[8].mxu0 }
 0x3b9   : > { %v2846_v12 = vadd.f32 %v1562_v36, %v1510_v15  ;;  %v1564_v13 = vpop.f32.mrb[9].mxu0 }
 0x3ba   : > { %v2848_v26 = vadd.f32 %v1564_v13, %v1510_v15  ;;  %v1566_v54 = vpop.f32.mrb[10].mxu0 }
 0x3bb   : > { %v2850_v57 = vadd.f32 %v1566_v54, %v1514_v25  ;;  %v1568_v45 = vpop.f32.mrb[11].mxu0 }
 0x3bc   : > { %v1614_v49 = vadd.f32 %v2848_v26, %v2846_v12  ;;  %v2854_v38 = vadd.f32 %v1568_v45, %v1514_v25  ;;  %v1605_v58 = vpop.f32.mrb[8].mxu1 }
 0x3bd   : > { %v2856_v59 = vadd.f32 %v1605_v58, %v1510_v15  ;;  %v1607_v9 = vpop.f32.mrb[9].mxu1 }
 0x3be   : > { %v1617_v60 = vadd.f32 %v2854_v38, %v2850_v57  ;;  %v2860_v1 = vadd.f32 %v1607_v9, %v1510_v15  ;;  %v1609_v16 = vpop.f32.mrb[10].mxu1  ;;  %1615 = vadd.xlane.f32.xlu1 %v1614_v49 }
 0x3bf   : > { %v2862_v61 = vadd.f32 %v1609_v16, %v1514_v25  ;;  %v1611_v40 = vpop.f32.mrb[11].mxu1 }
 0x3c0   : > { %v1681_v3 = vadd.f32 %v2860_v1, %v2856_v59  ;;  %v2866_v18 = vadd.f32 %v1611_v40, %v1514_v25  ;;  %1618 = vadd.xlane.f32.xlu0 %v1617_v60 }
 0x3c2   : > { %v1684_v4 = vadd.f32 %v2866_v18, %v2862_v61  ;;  %1682 = vadd.xlane.f32.xlu1 %v1681_v3 }
 0x3c4   : > { %1685 = vadd.xlane.f32.xlu0 %v1684_v4 }
 0x44b   : > { %v1616_v33 = vpop.xlane.xlu1 %1615 }
 0x44c   : > { %v1620_v24 = vmul.f32 0.00390625, %v1616_v33 }
 0x44d   : > { %v1619_v5 = vpop.xlane.xlu0 %1618 }
 0x44e   : > { %v1622_v0 = vmul.f32 %v1620_v24, %v2941_v47  ;;  %v1621_v31 = vmul.f32 0.00390625, %v1619_v5 }
 0x44f   : > { %v1683_v53 = vpop.xlane.xlu1 %1682 }
 0x450   : > { %v1623_v7 = vmul.f32 %v1621_v31, %v2942_v44  ;;  %v1687_v34 = vmul.f32 0.00390625, %v1683_v53  ;;  %v1625_v46 = vsel %vm1624_vm9, %v1622_v0, 0.0  ;;  %v2944_v31 = vld [vmem:[#allocation4_spill] sm:$0xff] }
 0x451   : > { %v1686_v48 = vpop.xlane.xlu0 %1685 }
 0x452   : > { %v1626_v37 = vsel %vm1624_vm9, %v1623_v7, 0.0  ;;  %v1689_v22 = vmul.f32 %v1687_v34, %v2941_v47  ;;  %v1688_v11 = vmul.f32 0.00390625, %v1686_v48  ;;  %v2946_v34 = vld [vmem:[#allocation6_spill] sm:$0xff] }
 0x453   : > { %v1627_v32 = vadd.f32 %v1626_v37, %v1625_v46 }
 0x454   : > { %v1690_v19 = vmul.f32 %v1688_v11, %v2942_v44  ;;  %v1691_v63 = vsel %vm1624_vm9, %v1689_v22, 0.0 }
 0x455   : > { %v1628_v29 = vrot.slane %v1627_v32, 4 }
 0x456   : > { %v1692_v27 = vsel %vm1624_vm9, %v1690_v19, 0.0 }
 0x457   : > { %v1629_v2 = vadd.f32 %v1628_v29, %v1627_v32  ;;  %v1693_v39 = vadd.f32 %v1692_v27, %v1691_v63  ;;  %v2947_v29 = vld [vmem:[#allocation9_spill] sm:$0xff]  ;;  %v2948_v27 = vld [vmem:[#allocation10_spill] sm:$0xff] }
 0x459   : > { %v1630_v30 = vrot.slane %v1629_v2, 2  ;;  %v1694_v28 = vrot.slane %v1693_v39, 4 }
 0x45b   : > { %v1631_v42 = vadd.f32 %v1630_v30, %v1629_v2  ;;  %v1695_v14 = vadd.f32 %v1694_v28, %v1693_v39 }
 0x45d   : > { %v1696_v21 = vrot.slane %v1695_v14, 2  ;;  %v1632_v20 = vrot.slane %v1631_v42, 1 }
 0x45f   : > { %v1697_v23 = vadd.f32 %v1696_v21, %v1695_v14  ;;  %v1633_v17 = vadd.f32 %v1632_v20, %v1631_v42  ;;  %v2949_v20 = vld [vmem:[#allocation7_spill] sm:$0xff] }
 0x461   : > { %v1634_v55 = vmax.f32 %v1633_v17, 0.0  ;;  %v1698_v52 = vrot.slane %v1697_v23, 1  ;;  %v2950_v17 = vld [vmem:[#allocation8_spill] sm:$0xff] }
 0x463   : > { %1636 = vrot.lane.b32.xlu1 %v1634_v55, %s1907_s27  ;;  %v1699_v6 = vadd.f32 %v1698_v52, %v1697_v23 }
 0x465   : > { %v1700_v35 = vmax.f32 %v1699_v6, 0.0 }
 0x467   : > { %801 = vperm.xlu1 %1868, %v2941_v47   ;;  %1702 = vrot.lane.b32.xlu0 %v1700_v35, %s1907_s27 }
 0x46b   : > { %806 = vperm.xlu1 %1868, %v2942_v44  }
 0x46f   : > { %1870 = vset.pattern.permute.xlu1 %v1914_v43 }
 0x4d5   : > { %v1637_v50 = vpop.permute.xlu1 %1636 }
 0x4d6   : > { %v1639_v41 = vmul.f32 %v1637_v50, %v2941_v47  ;;  %v1640_v56 = vmul.f32 %v1637_v50, %v2942_v44 }
 0x4d8   : > { %v1837_v10 = vmul.f32 -1.442695, %v1639_v41  ;;  %v1838_v62 = vmul.f32 -1.442695, %v1640_v56 }
 0x4d9   : > { %v1703_v8 = vpop.permute.xlu0 %1702 }
 0x4da   : > { %1880 = vpow2.f32 %v1837_v10  ;;  %v1705_v51 = vmul.f32 %v1703_v8, %v2941_v47  ;;  %v1706_v15 = vmul.f32 %v1703_v8, %v2942_v44  ;;  %v2943_v47 = vld [vmem:[#allocation3_spill] sm:$0xff]  ;;  %v2945_v44 = vld [vmem:[#allocation5_spill] sm:$0xff] }
 0x4db   : > { %1882 = vpow2.f32 %v1838_v62 }
 0x4dc   : > { %v1839_v36 = vmul.f32 -1.442695, %v1705_v51  ;;  %v1840_v25 = vmul.f32 -1.442695, %v1706_v15 }
 0x4de   : > { %1884 = vpow2.f32 %v1839_v36 }
 0x4df   : > { %1886 = vpow2.f32 %v1840_v25 }
 0x4e4   : > { %v1881_v13 = vpop.eup %1880 }
 0x4e5   : > { %v1883_v54 = vpop.eup %1882  ;;  %v1649_v45 = vadd.f32 1.0, %v1881_v13 }
 0x4e6   : > { %v1650_v49 = vadd.f32 1.0, %v1883_v54  ;;  %v802_v24 = vpop.permute.xlu1 %801 }
 0x4e7   : > { %1888 = vrcp.f32 %v1649_v45  ;;  %v879_v0 = vadd.f32 %v2943_v47, %v802_v24  ;;  %v881_v53 = vadd.f32 %v2944_v31, %v802_v24  ;;  %v932_v23 = vadd.f32 %v2949_v20, %v802_v24 }
 0x4e8   : > { %v1885_v58 = vpop.eup %1884  ;;  %1890 = vrcp.f32 %v1650_v49  ;;  %v934_v55 = vadd.f32 %v2950_v17, %v802_v24 }
 0x4e9   : > { %v1887_v9 = vpop.eup %1886  ;;  %v1715_v60 = vadd.f32 1.0, %v1885_v58  ;;  %v950_v37 = vmax.f32 %v879_v0, 0.0  ;;  %v951_v22 = vmax.f32 %v881_v53, 0.0  ;;  %v952_v62 = vmax.f32 %v932_v23, 0.0 }
 0x4ea   : > { %v1716_v16 = vadd.f32 1.0, %v1887_v9  ;;  %v807_v5 = vpop.permute.xlu1 %806  ;;  %v953_v8 = vmax.f32 %v934_v55, 0.0 }
 0x4eb   : > { %1892 = vrcp.f32 %v1715_v60  ;;  %v883_v7 = vadd.f32 %v2945_v44, %v807_v5  ;;  %v885_v48 = vadd.f32 %v2946_v34, %v807_v5  ;;  %v936_v63 = vadd.f32 %v2947_v29, %v807_v5 }
 0x4ec   : > { %1894 = vrcp.f32 %v1716_v16  ;;  %v938_v2 = vadd.f32 %v2948_v27, %v807_v5 }
 0x4ed   : > { %v954_v39 = vmax.f32 %v883_v7, 0.0  ;;  %v955_v30 = vmax.f32 %v885_v48, 0.0  ;;  %v956_v6 = vmax.f32 %v936_v63, 0.0 }
 0x4ee   : > { %v957_v35 = vmax.f32 %v938_v2, 0.0 }
 0x4f1   : > { %v1889_v40 = vpop.eup %1888 }
 0x4f2   : > { %v1891_v3 = vpop.eup %1890  ;;  %1657 = vperm.xlu0 %1869, %v1889_v40  }
 0x4f3   : > { %1662 = vperm.xlu1 %1870, %v1891_v3  }
 0x4f5   : > { %v1893_v4 = vpop.eup %1892 }
 0x4f6   : > { %v1895_v33 = vpop.eup %1894 }
 0x4f7   : > { %1723 = vperm.xlu1 %1870, %v1893_v4   ;;  %1728 = vperm.xlu0 %1869, %v1895_v33  }
 0x571   : > { %v1658_v46 = vpop.permute.xlu0 %1657 }
 0x572   : > { %v1665_v11 = vmul.f32 %v1658_v46, %v2846_v12  ;;  %v1666_v32 = vmul.f32 %v1658_v46, %v2848_v26  ;;  %v1663_v19 = vpop.permute.xlu1 %1662 }
 0x573   : > { %v1667_v28 = vmul.f32 %v1663_v19, %v2850_v57  ;;  %v1668_v42 = vmul.f32 %v1663_v19, %v2854_v38 }
 0x574   : > { %v1669_v14 = vadd.f32 %v1665_v11, %v950_v37  ;;  %v1670_v21 = vadd.f32 %v1666_v32, %v951_v22 }
 0x575   : > { %v1671_v12 = vadd.f32 %v1667_v28, %v954_v39  ;;  %v1672_v26 = vadd.f32 %v1668_v42, %v955_v30 }
 0x576   : > { %v1673_v52 = vmax.f32 %v1669_v14, 0.0  ;;  %v1674_v57 = vmax.f32 %v1670_v21, 0.0  ;;  %v1729_v38 = vpop.permute.xlu0 %1728  ;;  %v1724_v43 = vpop.permute.xlu1 %1723 }
 0x577   : > { %v1675_v50 = vmax.f32 %v1671_v12, 0.0  ;;  %v1676_v41 = vmax.f32 %v1672_v26, 0.0  ;;  %v1733_v56 = vmul.f32 %v1729_v38, %v2862_v61  ;;  %v1734_v10 = vmul.f32 %v1729_v38, %v2866_v18 }
 0x578   : > { %1677 = vst [vmem:[%s2899_s29] sm:$0xff] %v1673_v52  ;;  %1678 = vst [vmem:[%s2899_s29 + $0x8] sm:$0xff] %v1674_v57  ;;  %v1731_v51 = vmul.f32 %v1724_v43, %v2856_v59  ;;  %v1732_v15 = vmul.f32 %v1724_v43, %v2860_v1 }
 0x579   : > { %1679 = vst [vmem:[%s2899_s29 + $0x20] sm:$0xff] %v1675_v50  ;;  %1680 = vst [vmem:[%s2899_s29 + $0x28] sm:$0xff] %v1676_v41  ;;  %v1737_v36 = vadd.f32 %v1733_v56, %v956_v6  ;;  %v1738_v25 = vadd.f32 %v1734_v10, %v957_v35 }
 0x57a   : > { %v1735_v13 = vadd.f32 %v1731_v51, %v952_v62  ;;  %v1736_v61 = vadd.f32 %v1732_v15, %v953_v8 }
 0x57b   : > { %v1741_v54 = vmax.f32 %v1737_v36, 0.0  ;;  %v1742_v18 = vmax.f32 %v1738_v25, 0.0 }
 0x57c   : > { %v1739_v45 = vmax.f32 %v1735_v13, 0.0  ;;  %v1740_v49 = vmax.f32 %v1736_v61, 0.0 }
 0x57d   : > { %1745 = vst [vmem:[%s2899_s29 + $0x30] sm:$0xff] %v1741_v54  ;;  %1746 = vst [vmem:[%s2899_s29 + $0x38] sm:$0xff] %v1742_v18 }
 0x57e   : > { %1743 = vst [vmem:[%s2899_s29 + $0x10] sm:$0xff] %v1739_v45  ;;  %1744 = vst [vmem:[%s2899_s29 + $0x18] sm:$0xff] %v1740_v49 }
 0x57f PF: > { %s15_s18 = sadd.s32 1, %s1902_s18  }
 0x580   : > { %p12_p4 = scmp.ge.s32.totalorder %s15_s18, 4  }
 0x582   :  { %14 = sbr.rel (!%p12_p4) target bundleno = 1 (0x1), region = 77 }

</bundles_post_ra>
